<compile_context>
chip_gen: v6e
topology: v6e:2x2x1
jax: 0.10.0
libtpu: 0.0.40
codegen_flags: <defaults>
</compile_context>

<pallas_src>
import functools

import jax
import jax.numpy as jnp
from jax.experimental import pallas as pl
from jax.experimental.pallas import tpu as pltpu

# Layer sizes of the PyTorch module.
LAYER_SIZES = [1024, 512, 256, 128, 64, 2]
OUT_FEATURES = LAYER_SIZES[-1]
PADDED_H5 = 128    # 64-wide hidden layer padded to a full 128 lanes
PADDED_OUT = 128   # lane-dense output: final layer padded 2 -> 128 columns
MAX_TB = 1024      # batch-tile cap (review: 512-1024 on v7x, up to 2048 v5e/v6e)


def _round_up(n, m):
    return ((n + m - 1) // m) * m


def mlp_kernel(x_ref,
               w1_ref, b1_ref,
               w2_ref, b2_ref,
               w3_ref, b3_ref,
               w4_ref, b4_ref,
               w5_ref, b5_ref,
               w6_ref, b6_ref,
               o_ref):
    """Fused 6-layer MLP forward on one (TB, in_features) bf16 batch tile.

    All weights are bf16 and VMEM-resident across the batch grid; every matmul
    runs on the MXU with f32 accumulation; bias-add (+ReLU) happens in f32 and
    the result is immediately downcast to bf16 so inter-layer activations stay
    half-width (less spill / vst traffic).
    """
    def dense(h, w_ref, b_ref, relu):
        y = jnp.dot(h, w_ref[...], preferred_element_type=jnp.float32)
        y = y + b_ref[...]            # (1, out) f32 bias broadcasts over batch
        if relu:
            y = jnp.maximum(y, 0.0)
        return y.astype(jnp.bfloat16)  # fused ReLU + bf16 downcast

    h = x_ref[...]                     # already bf16 (cast in the wrapper)
    h = dense(h, w1_ref, b1_ref, relu=True)
    h = dense(h, w2_ref, b2_ref, relu=True)
    h = dense(h, w3_ref, b3_ref, relu=True)
    h = dense(h, w4_ref, b4_ref, relu=True)
    h = dense(h, w5_ref, b5_ref, relu=True)
    h = dense(h, w6_ref, b6_ref, relu=False)   # output layer: no activation
    o_ref[...] = h.astype(o_ref.dtype)


@functools.partial(jax.jit, static_argnames=("tb",))
def _net_forward_tiled(x, kparams, tb):
    """x: (batch, in_features) bf16.

    kparams: flat tuple (w1, b1, ..., w6, b6); wi is bf16 (in, out), bi is f32
    (1, out); layer 5 is zero-padded to PADDED_H5 and layer 6 to PADDED_OUT.
    Returns (batch, PADDED_OUT) bf16.  The last batch tile may be partial
    (masked loads/stores); rows are independent so this is safe.
    """
    batch, in_features = x.shape
    grid = (pl.cdiv(batch, tb),)

    def resident_spec(shape):
        # Constant block index across the batch grid -> stays in VMEM, no re-DMA.
        return pl.BlockSpec(shape, lambda i: (0, 0))

    in_specs = [pl.BlockSpec((tb, in_features), lambda i: (i, 0))]
    in_specs += [resident_spec(p.shape) for p in kparams]
    out_specs = pl.BlockSpec((tb, PADDED_OUT), lambda i: (i, 0))

    sizes = [in_features, 1024, 512, 256, 128, PADDED_H5, PADDED_OUT]
    flops = 2 * batch * sum(a * b for a, b in zip(sizes[:-1], sizes[1:]))
    bytes_accessed = (int(x.size) * x.dtype.itemsize
                      + sum(int(p.size) * p.dtype.itemsize for p in kparams)
                      + batch * PADDED_OUT * 2)

    return pl.pallas_call(
        mlp_kernel,
        out_shape=jax.ShapeDtypeStruct((batch, PADDED_OUT), jnp.bfloat16),
        grid_spec=pltpu.PrefetchScalarGridSpec(
            num_scalar_prefetch=0,
            grid=grid,
            in_specs=in_specs,
            out_specs=out_specs,
        ),
        compiler_params=pltpu.CompilerParams(
            dimension_semantics=("parallel",),
            vmem_limit_bytes=32 * 1024 * 1024,
        ),
        cost_estimate=pl.CostEstimate(
            flops=flops, transcendentals=0, bytes_accessed=bytes_accessed),
    )(x, *kparams)


def net_forward(x, kparams):
    """Full forward pass: bf16-cast the input, run the fused kernel over
    batch tiles, slice off the padded output columns, return f32."""
    batch = x.shape[0]
    if x.dtype != jnp.bfloat16:
        x = x.astype(jnp.bfloat16)
    # Batch tile: multiple of 8 sublanes, capped at MAX_TB rows.  Small batches
    # get a single exact tile; large batches get MAX_TB tiles with a masked
    # ragged last tile (no wrapper-side padding copy of x).
    tb = min(MAX_TB, _round_up(max(batch, 1), 8))
    out = _net_forward_tiled(x, kparams, tb)
    return out[:, :OUT_FEATURES].astype(jnp.float32)


def init_params(key, input_size):
    """Deterministic init mimicking torch.nn.Linear (U[-1/sqrt(fan_in), ...]).

    Weights are stored as (in, out) — transposed relative to PyTorch's
    (out, in) — so the kernel computes x @ W + b directly. Returned in f32.
    """
    params = []
    fan_in = input_size
    for fan_out in LAYER_SIZES:
        key, kw, kb = jax.random.split(key, 3)
        bound = 1.0 / (fan_in ** 0.5)
        w = jax.random.uniform(kw, (fan_in, fan_out), jnp.float32, -bound, bound)
        b = jax.random.uniform(kb, (1, fan_out), jnp.float32, -bound, bound)
        params += [w, b]
        fan_in = fan_out
    return tuple(params)


def prepare_kernel_params(params):
    """Cast weights to bf16 (biases stay f32) and zero-pad:
      * layer 5 (128->64): W5 cols and b5 padded 64 -> PADDED_H5,
      * layer 6 (64->2):   W6 rows padded to PADDED_H5, W6 cols / b6 padded
                           to PADDED_OUT,
    so every matmul operand/result is a full 128 lanes and the output store is
    lane-dense.  Padded columns carry zero weight/bias, so ReLU(0)=0 propagates
    zeros and the real outputs are unchanged."""
    n_layers = len(params) // 2
    kparams = []
    for i in range(n_layers):
        w = params[2 * i].astype(jnp.bfloat16)
        b = params[2 * i + 1].astype(jnp.float32)
        if i == n_layers - 2:                      # 128 -> 64 layer
            pad_c = PADDED_H5 - w.shape[1]
            w = jnp.pad(w, ((0, 0), (0, pad_c)))
            b = jnp.pad(b, ((0, 0), (0, pad_c)))
        elif i == n_layers - 1:                    # 64 -> 2 output layer
            pad_r = PADDED_H5 - w.shape[0]
            pad_c = PADDED_OUT - w.shape[1]
            w = jnp.pad(w, ((0, pad_r), (0, pad_c)))
            b = jnp.pad(b, ((0, 0), (0, PADDED_OUT - b.shape[1])))
        kparams += [w, b]
    return tuple(kparams)


def reference_forward(x, kparams):
    """Pure-JAX reference mirroring the kernel math exactly
    (bf16 weights + bf16 inter-layer activations, f32 accumulation)."""
    h = x.astype(jnp.bfloat16)
    n_layers = len(kparams) // 2
    for i in range(n_layers):
        w, b = kparams[2 * i], kparams[2 * i + 1]
        y = jnp.dot(h, w, preferred_element_type=jnp.float32) + b
        if i < n_layers - 1:
            y = jnp.maximum(y, 0.0)
        h = y.astype(jnp.bfloat16)
    return h[:, :OUT_FEATURES].astype(jnp.float32)


if __name__ == "__main__":
    INPUT_SIZE = 32
    BATCH = 8

    key = jax.random.PRNGKey(0)
    key, kx = jax.random.split(key)
    x = jax.random.normal(kx, (BATCH, INPUT_SIZE), jnp.float32)

    params_f32 = init_params(key, INPUT_SIZE)
    kparams = prepare_kernel_params(params_f32)

    out = net_forward(x, kparams)
    out = jax.block_until_ready(out)

    ref = reference_forward(x, kparams)
    assert out.shape == (BATCH, OUT_FEATURES), out.shape
    assert jnp.allclose(out, ref, atol=1e-2, rtol=1e-2), (
        float(jnp.max(jnp.abs(out - ref))))

    print("KERNEL_OK")
</pallas_src>

<mosaic_0001>
module attributes {stable_mosaic.version = 11 : i64} {
  func.func @mlp_kernel(%arg0: i32, %arg1: memref<8x32xbf16, #tpu.memory_space<vmem>>, %arg2: memref<32x1024xbf16, #tpu.memory_space<vmem>>, %arg3: memref<1x1024xf32, #tpu.memory_space<vmem>>, %arg4: memref<1024x512xbf16, #tpu.memory_space<vmem>>, %arg5: memref<1x512xf32, #tpu.memory_space<vmem>>, %arg6: memref<512x256xbf16, #tpu.memory_space<vmem>>, %arg7: memref<1x256xf32, #tpu.memory_space<vmem>>, %arg8: memref<256x128xbf16, #tpu.memory_space<vmem>>, %arg9: memref<1x128xf32, #tpu.memory_space<vmem>>, %arg10: memref<128x128xbf16, #tpu.memory_space<vmem>>, %arg11: memref<1x128xf32, #tpu.memory_space<vmem>>, %arg12: memref<128x128xbf16, #tpu.memory_space<vmem>>, %arg13: memref<1x128xf32, #tpu.memory_space<vmem>>, %arg14: memref<8x128xbf16, #tpu.memory_space<vmem>>) attributes {dimension_semantics = [#tpu.dimension_semantics<parallel>], iteration_bounds = array<i64: 1>, scalar_prefetch = 0 : i64, scratch_operands = 0 : i64, tpu.core_type = #tpu.core_type<tc>, window_params = [{transform_indices = @transform_0, window_bounds = array<i64: 8, 32>}, {pipeline_mode = #tpu.pipeline_mode<synchronous>, transform_indices = @transform_1, window_bounds = array<i64: 32, 1024>}, {pipeline_mode = #tpu.pipeline_mode<synchronous>, transform_indices = @transform_2, window_bounds = array<i64: 1, 1024>}, {pipeline_mode = #tpu.pipeline_mode<synchronous>, transform_indices = @transform_3, window_bounds = array<i64: 1024, 512>}, {pipeline_mode = #tpu.pipeline_mode<synchronous>, transform_indices = @transform_4, window_bounds = array<i64: 1, 512>}, {pipeline_mode = #tpu.pipeline_mode<synchronous>, transform_indices = @transform_5, window_bounds = array<i64: 512, 256>}, {pipeline_mode = #tpu.pipeline_mode<synchronous>, transform_indices = @transform_6, window_bounds = array<i64: 1, 256>}, {pipeline_mode = #tpu.pipeline_mode<synchronous>, transform_indices = @transform_7, window_bounds = array<i64: 256, 128>}, {pipeline_mode = #tpu.pipeline_mode<synchronous>, transform_indices = @transform_8, window_bounds = array<i64: 1, 128>}, {pipeline_mode = #tpu.pipeline_mode<synchronous>, transform_indices = @transform_9, window_bounds = array<i64: 128, 128>}, {pipeline_mode = #tpu.pipeline_mode<synchronous>, transform_indices = @transform_10, window_bounds = array<i64: 1, 128>}, {pipeline_mode = #tpu.pipeline_mode<synchronous>, transform_indices = @transform_11, window_bounds = array<i64: 128, 128>}, {pipeline_mode = #tpu.pipeline_mode<synchronous>, transform_indices = @transform_12, window_bounds = array<i64: 1, 128>}, {transform_indices = @transform_13, window_bounds = array<i64: 8, 128>}]} {
    %c0 = arith.constant 0 : index
    %c0_0 = arith.constant 0 : index
    %0 = vector.load %arg1[%c0, %c0_0] : memref<8x32xbf16, #tpu.memory_space<vmem>>, vector<8x32xbf16>
    %c0_1 = arith.constant 0 : index
    %c0_2 = arith.constant 0 : index
    %1 = vector.load %arg2[%c0_1, %c0_2] : memref<32x1024xbf16, #tpu.memory_space<vmem>>, vector<32x1024xbf16>
    %cst = arith.constant dense<0.000000e+00> : vector<8x1024xf32>
    %2 = tpu.matmul %0, %1, %cst {dimension_numbers = #tpu.dot_dimension_numbers<[1], [0], [0], [1], [0, 0, 1, 1], [], []>} : vector<8x32xbf16>, vector<32x1024xbf16>, vector<8x1024xf32> -> vector<8x1024xf32>
    %c0_3 = arith.constant 0 : index
    %c0_4 = arith.constant 0 : index
    %3 = vector.load %arg3[%c0_3, %c0_4] : memref<1x1024xf32, #tpu.memory_space<vmem>>, vector<1x1024xf32>
    %4 = vector.broadcast %3 : vector<1x1024xf32> to vector<8x1024xf32>
    %5 = arith.addf %2, %4 : vector<8x1024xf32>
    %cst_5 = arith.constant 0.000000e+00 : f32
    %6 = vector.broadcast %cst_5 : f32 to vector<8x1024xf32>
    %7 = arith.maximumf %5, %6 : vector<8x1024xf32>
    %8 = arith.truncf %7 : vector<8x1024xf32> to vector<8x1024xbf16>
    %c0_6 = arith.constant 0 : index
    %c0_7 = arith.constant 0 : index
    %9 = vector.load %arg4[%c0_6, %c0_7] : memref<1024x512xbf16, #tpu.memory_space<vmem>>, vector<1024x512xbf16>
    %cst_8 = arith.constant dense<0.000000e+00> : vector<8x512xf32>
    %10 = tpu.matmul %8, %9, %cst_8 {dimension_numbers = #tpu.dot_dimension_numbers<[1], [0], [0], [1], [0, 0, 1, 1], [], []>} : vector<8x1024xbf16>, vector<1024x512xbf16>, vector<8x512xf32> -> vector<8x512xf32>
    %c0_9 = arith.constant 0 : index
    %c0_10 = arith.constant 0 : index
    %11 = vector.load %arg5[%c0_9, %c0_10] : memref<1x512xf32, #tpu.memory_space<vmem>>, vector<1x512xf32>
    %12 = vector.broadcast %11 : vector<1x512xf32> to vector<8x512xf32>
    %13 = arith.addf %10, %12 : vector<8x512xf32>
    %cst_11 = arith.constant 0.000000e+00 : f32
    %14 = vector.broadcast %cst_11 : f32 to vector<8x512xf32>
    %15 = arith.maximumf %13, %14 : vector<8x512xf32>
    %16 = arith.truncf %15 : vector<8x512xf32> to vector<8x512xbf16>
    %c0_12 = arith.constant 0 : index
    %c0_13 = arith.constant 0 : index
    %17 = vector.load %arg6[%c0_12, %c0_13] : memref<512x256xbf16, #tpu.memory_space<vmem>>, vector<512x256xbf16>
    %cst_14 = arith.constant dense<0.000000e+00> : vector<8x256xf32>
    %18 = tpu.matmul %16, %17, %cst_14 {dimension_numbers = #tpu.dot_dimension_numbers<[1], [0], [0], [1], [0, 0, 1, 1], [], []>} : vector<8x512xbf16>, vector<512x256xbf16>, vector<8x256xf32> -> vector<8x256xf32>
    %c0_15 = arith.constant 0 : index
    %c0_16 = arith.constant 0 : index
    %19 = vector.load %arg7[%c0_15, %c0_16] : memref<1x256xf32, #tpu.memory_space<vmem>>, vector<1x256xf32>
    %20 = vector.broadcast %19 : vector<1x256xf32> to vector<8x256xf32>
    %21 = arith.addf %18, %20 : vector<8x256xf32>
    %cst_17 = arith.constant 0.000000e+00 : f32
    %22 = vector.broadcast %cst_17 : f32 to vector<8x256xf32>
    %23 = arith.maximumf %21, %22 : vector<8x256xf32>
    %24 = arith.truncf %23 : vector<8x256xf32> to vector<8x256xbf16>
    %c0_18 = arith.constant 0 : index
    %c0_19 = arith.constant 0 : index
    %25 = vector.load %arg8[%c0_18, %c0_19] : memref<256x128xbf16, #tpu.memory_space<vmem>>, vector<256x128xbf16>
    %cst_20 = arith.constant dense<0.000000e+00> : vector<8x128xf32>
    %26 = tpu.matmul %24, %25, %cst_20 {dimension_numbers = #tpu.dot_dimension_numbers<[1], [0], [0], [1], [0, 0, 1, 1], [], []>} : vector<8x256xbf16>, vector<256x128xbf16>, vector<8x128xf32> -> vector<8x128xf32>
    %c0_21 = arith.constant 0 : index
    %c0_22 = arith.constant 0 : index
    %27 = vector.load %arg9[%c0_21, %c0_22] : memref<1x128xf32, #tpu.memory_space<vmem>>, vector<1x128xf32>
    %28 = vector.broadcast %27 : vector<1x128xf32> to vector<8x128xf32>
    %29 = arith.addf %26, %28 : vector<8x128xf32>
    %cst_23 = arith.constant 0.000000e+00 : f32
    %30 = vector.broadcast %cst_23 : f32 to vector<8x128xf32>
    %31 = arith.maximumf %29, %30 : vector<8x128xf32>
    %32 = arith.truncf %31 : vector<8x128xf32> to vector<8x128xbf16>
    %c0_24 = arith.constant 0 : index
    %c0_25 = arith.constant 0 : index
    %33 = vector.load %arg10[%c0_24, %c0_25] : memref<128x128xbf16, #tpu.memory_space<vmem>>, vector<128x128xbf16>
    %cst_26 = arith.constant dense<0.000000e+00> : vector<8x128xf32>
    %34 = tpu.matmul %32, %33, %cst_26 {dimension_numbers = #tpu.dot_dimension_numbers<[1], [0], [0], [1], [0, 0, 1, 1], [], []>} : vector<8x128xbf16>, vector<128x128xbf16>, vector<8x128xf32> -> vector<8x128xf32>
    %c0_27 = arith.constant 0 : index
    %c0_28 = arith.constant 0 : index
    %35 = vector.load %arg11[%c0_27, %c0_28] : memref<1x128xf32, #tpu.memory_space<vmem>>, vector<1x128xf32>
    %36 = vector.broadcast %35 : vector<1x128xf32> to vector<8x128xf32>
    %37 = arith.addf %34, %36 : vector<8x128xf32>
    %cst_29 = arith.constant 0.000000e+00 : f32
    %38 = vector.broadcast %cst_29 : f32 to vector<8x128xf32>
    %39 = arith.maximumf %37, %38 : vector<8x128xf32>
    %40 = arith.truncf %39 : vector<8x128xf32> to vector<8x128xbf16>
    %c0_30 = arith.constant 0 : index
    %c0_31 = arith.constant 0 : index
    %41 = vector.load %arg12[%c0_30, %c0_31] : memref<128x128xbf16, #tpu.memory_space<vmem>>, vector<128x128xbf16>
    %cst_32 = arith.constant dense<0.000000e+00> : vector<8x128xf32>
    %42 = tpu.matmul %40, %41, %cst_32 {dimension_numbers = #tpu.dot_dimension_numbers<[1], [0], [0], [1], [0, 0, 1, 1], [], []>} : vector<8x128xbf16>, vector<128x128xbf16>, vector<8x128xf32> -> vector<8x128xf32>
    %c0_33 = arith.constant 0 : index
    %c0_34 = arith.constant 0 : index
    %43 = vector.load %arg13[%c0_33, %c0_34] : memref<1x128xf32, #tpu.memory_space<vmem>>, vector<1x128xf32>
    %44 = vector.broadcast %43 : vector<1x128xf32> to vector<8x128xf32>
    %45 = arith.addf %42, %44 : vector<8x128xf32>
    %46 = arith.truncf %45 : vector<8x128xf32> to vector<8x128xbf16>
    %c0_35 = arith.constant 0 : index
    %c0_36 = arith.constant 0 : index
    %47 = vector.load %arg14[%c0_35, %c0_36] : memref<8x128xbf16, #tpu.memory_space<vmem>>, vector<8x128xbf16>
    tpu.vector_store %arg14[%c0_35, %c0_36], %46 {strides = array<i32>} : memref<8x128xbf16, #tpu.memory_space<vmem>>, vector<8x128xbf16>,
    return
  }
  func.func @transform_0(%arg0: i32) -> (i32, i32) {
    %c0_i32 = arith.constant 0 : i32
    %c0_i32_0 = arith.constant 0 : i32
    return %arg0, %c0_i32 : i32, i32
  }
  func.func @transform_1(%arg0: i32) -> (i32, i32) {
    %c0_i32 = arith.constant 0 : i32
    %c0_i32_0 = arith.constant 0 : i32
    %c0_i32_1 = arith.constant 0 : i32
    return %c0_i32, %c0_i32_0 : i32, i32
  }
  func.func @transform_2(%arg0: i32) -> (i32, i32) {
    %c0_i32 = arith.constant 0 : i32
    %c0_i32_0 = arith.constant 0 : i32
    %c0_i32_1 = arith.constant 0 : i32
    return %c0_i32, %c0_i32_0 : i32, i32
  }
  func.func @transform_3(%arg0: i32) -> (i32, i32) {
    %c0_i32 = arith.constant 0 : i32
    %c0_i32_0 = arith.constant 0 : i32
    %c0_i32_1 = arith.constant 0 : i32
    return %c0_i32, %c0_i32_0 : i32, i32
  }
  func.func @transform_4(%arg0: i32) -> (i32, i32) {
    %c0_i32 = arith.constant 0 : i32
    %c0_i32_0 = arith.constant 0 : i32
    %c0_i32_1 = arith.constant 0 : i32
    return %c0_i32, %c0_i32_0 : i32, i32
  }
  func.func @transform_5(%arg0: i32) -> (i32, i32) {
    %c0_i32 = arith.constant 0 : i32
    %c0_i32_0 = arith.constant 0 : i32
    %c0_i32_1 = arith.constant 0 : i32
    return %c0_i32, %c0_i32_0 : i32, i32
  }
  func.func @transform_6(%arg0: i32) -> (i32, i32) {
    %c0_i32 = arith.constant 0 : i32
    %c0_i32_0 = arith.constant 0 : i32
    %c0_i32_1 = arith.constant 0 : i32
    return %c0_i32, %c0_i32_0 : i32, i32
  }
  func.func @transform_7(%arg0: i32) -> (i32, i32) {
    %c0_i32 = arith.constant 0 : i32
    %c0_i32_0 = arith.constant 0 : i32
    %c0_i32_1 = arith.constant 0 : i32
    return %c0_i32, %c0_i32_0 : i32, i32
  }
  func.func @transform_8(%arg0: i32) -> (i32, i32) {
    %c0_i32 = arith.constant 0 : i32
    %c0_i32_0 = arith.constant 0 : i32
    %c0_i32_1 = arith.constant 0 : i32
    return %c0_i32, %c0_i32_0 : i32, i32
  }
  func.func @transform_9(%arg0: i32) -> (i32, i32) {
    %c0_i32 = arith.constant 0 : i32
    %c0_i32_0 = arith.constant 0 : i32
    %c0_i32_1 = arith.constant 0 : i32
    return %c0_i32, %c0_i32_0 : i32, i32
  }
  func.func @transform_10(%arg0: i32) -> (i32, i32) {
    %c0_i32 = arith.constant 0 : i32
    %c0_i32_0 = arith.constant 0 : i32
    %c0_i32_1 = arith.constant 0 : i32
    return %c0_i32, %c0_i32_0 : i32, i32
  }
  func.func @transform_11(%arg0: i32) -> (i32, i32) {
    %c0_i32 = arith.constant 0 : i32
    %c0_i32_0 = arith.constant 0 : i32
    %c0_i32_1 = arith.constant 0 : i32
    return %c0_i32, %c0_i32_0 : i32, i32
  }
  func.func @transform_12(%arg0: i32) -> (i32, i32) {
    %c0_i32 = arith.constant 0 : i32
    %c0_i32_0 = arith.constant 0 : i32
    %c0_i32_1 = arith.constant 0 : i32
    return %c0_i32, %c0_i32_0 : i32, i32
  }
  func.func @transform_13(%arg0: i32) -> (i32, i32) {
    %c0_i32 = arith.constant 0 : i32
    %c0_i32_0 = arith.constant 0 : i32
    return %arg0, %c0_i32 : i32, i32
  }
}

</mosaic_0001>

<bundles_post_ra>
// kernel: _net_forward_tiled.1
= control target key start
LH: loop header
LB: loop body
LE: loop exit
PB: predicated region body
PF: predicated region fallthrough
CT: control target
= control target key end

     0   :  { %18 = vsyncpa [#allocation3], 0  ;;  %s4718_s0 = inlined_call_operand.hbm [shape: bf16[8,32], index: 0, kind: input, shape index: {}]   ;;  %s4719_s1 = inlined_call_operand.hbm [shape: bf16[32,1024], index: 1, kind: input, shape index: {}]   ;;  %s4720_s2 = inlined_call_operand.hbm [shape: f32[1,1024], index: 2, kind: input, shape index: {}]   ;;  %s4721_s3 = inlined_call_operand.hbm [shape: bf16[1024,512], index: 3, kind: input, shape index: {}]   ;;  %s4722_s4 = inlined_call_operand.vmem [shape: f32[1,512], index: 4, kind: input, shape index: {}]   ;;  %s4723_s5 = inlined_call_operand.hbm [shape: bf16[512,256], index: 5, kind: input, shape index: {}]   ;;  %s4724_s6 = inlined_call_operand.vmem [shape: f32[1,256], index: 6, kind: input, shape index: {}]   ;;  %s4725_s7 = inlined_call_operand.hbm [shape: bf16[256,128], index: 7, kind: input, shape index: {}]   ;;  %s4726_s8 = inlined_call_operand.vmem [shape: f32[1,128], index: 8, kind: input, shape index: {}]   ;;  %s4727_s9 = inlined_call_operand.hbm [shape: bf16[128,128], index: 9, kind: input, shape index: {}]   ;;  %s4728_s10 = inlined_call_operand.vmem [shape: f32[1,128], index: 10, kind: input, shape index: {}]   ;;  %s4729_s11 = inlined_call_operand.hbm [shape: bf16[128,128], index: 11, kind: input, shape index: {}]   ;;  %s4730_s12 = inlined_call_operand.vmem [shape: f32[1,128], index: 12, kind: input, shape index: {}]   ;;  %s4731_s13 = inlined_call_operand.hbm [shape: bf16[8,128], index: 13, kind: output, shape index: {}]  }
   0x1   :  { %19 = vsyncpa [#allocation6], 0 }
   0x2   :  { %20 = vsyncpa [#allocation9], 0 }
   0x3   :  { %21 = vsyncpa [#allocation12], 0 }
   0x4   :  { %22 = vsyncpa [#allocation15], 0 }
   0x5   :  { %23 = vsyncpa [#allocation4], 0  ;;  %s4451_s25 = smov [#allocation5]  }
   0x6   :  { %s39_s26 = sshll.u32 %s4451_s25, 4  ;;  %s40_s26 = int_to_ptr.vmem [resolvable:$true] %s39_s26 }
   0x7   :  { %s4267_s27 = scalar_lea.vmem %s40_s26, 2048  ;;  %p4272_p1 = scmp.lt.s32.totalorder %s40_s26, %s40_s26 }
   0x8   :  { %p4268_p0 = scmp.ne.s32.totalorder %s40_s26, %s4267_s27  ;;  %p4273_p2 = scmp.lt.s32.totalorder %s4267_s27, %s4267_s27 }
   0xa   :  { %p4274_p3 = por %p4273_p2, %p4272_p1 }
   0xc   :  { %p4275_p4 = pnand %p4274_p3, %p4268_p0 }
   0xe   :  { %4278 = shalt.err (!%p4275_p4)
}
   0xf   :  { %s4452_s28 = smov 512   ;;  %s4453_s29 = smov 32  }
  0x10   :  { %45 = dma.hbm_to_vmem [thread:$0]  %s4719_s1, 2048, %s40_s26, [#allocation6], %s4452_s28, %s4452_s28, %s4453_s29  }
  0x11   :  { %s4454_s15 = smov [#allocation8]  }
  0x12   :  { %s61_s16 = sshll.u32 %s4454_s15, 4  ;;  %s62_s16 = int_to_ptr.vmem [resolvable:$true] %s61_s16 }
  0x13   :  { %s4287_s17 = scalar_lea.vmem %s62_s16, 32768  ;;  %p4292_p6 = scmp.lt.s32.totalorder %s62_s16, %s62_s16 }
  0x14   :  { %p4288_p5 = scmp.ne.s32.totalorder %s62_s16, %s4287_s17  ;;  %p4293_p7 = scmp.lt.s32.totalorder %s4287_s17, %s4287_s17 }
  0x16   :  { %p4294_p8 = por %p4293_p7, %p4292_p6 }
  0x18   :  { %p4295_p9 = pnand %p4294_p8, %p4288_p5 }
  0x1a   :  { %4298 = shalt.err (!%p4295_p9)
}
  0x1b   :  { %s4455_s18 = smov 256   ;;  %s4456_s19 = smov 16  }
  0x1c   :  { %67 = dma.hbm_to_vmem [thread:$0]  %s4721_s3, 32768, %s62_s16, [#allocation9], %s4455_s18, %s4455_s18, %s4456_s19  }
  0x1d   :  { %s4457_s22 = smov [#allocation11]  }
  0x1e   :  { %s89_s23 = sshll.u32 %s4457_s22, 4  ;;  %s90_s23 = int_to_ptr.vmem [resolvable:$true] %s89_s23 }
  0x1f   :  { %s4307_s1 = scalar_lea.vmem %s90_s23, 2048  ;;  %p4312_p11 = scmp.lt.s32.totalorder %s90_s23, %s90_s23 }
  0x20   :  { %p4308_p10 = scmp.ne.s32.totalorder %s90_s23, %s4307_s1  ;;  %p4313_p12 = scmp.lt.s32.totalorder %s4307_s1, %s4307_s1 }
  0x22   :  { %p4314_p13 = por %p4313_p12, %p4312_p11 }
  0x24   :  { %p4315_p0 = pnand %p4314_p13, %p4308_p10 }
  0x26   :  { %4318 = shalt.err (!%p4315_p0)
}
  0x27   :  { %s4458_s24 = smov 64   ;;  %s4459_s25 = smov 4  }
  0x28   :  { %95 = dma.hbm_to_vmem [thread:$0]  %s4725_s7, 2048, %s90_s23, [#allocation12], %s4458_s24, %s4458_s24, %s4459_s25  }
  0x29   :  { %s4460_s3 = smov [#allocation2]   ;;  %s4461_s29 = smov [#allocation7]  }
  0x2a   :  { %s30_s28 = sshll.u32 %s4460_s3, 4  ;;  %s52_s30 = sshll.u32 %s4461_s29, 4  ;;  %s31_s28 = int_to_ptr.vmem [resolvable:$true] %s30_s28  ;;  %s53_s30 = int_to_ptr.vmem [resolvable:$true] %s52_s30 }
  0x2b   :  { %s4327_s14 = scalar_lea.vmem %s31_s28, 64  ;;  %p4332_p2 = scmp.lt.s32.totalorder %s31_s28, %s31_s28 }
  0x2c   :  { %p4328_p1 = scmp.ne.s32.totalorder %s31_s28, %s4327_s14  ;;  %p4333_p3 = scmp.lt.s32.totalorder %s4327_s14, %s4327_s14 }
  0x2e   :  { %p4334_p4 = por %p4333_p3, %p4332_p2 }
  0x30   :  { %p4335_p5 = pnand %p4334_p4, %p4328_p1 }
  0x32   :  { %4338 = shalt.err (!%p4335_p5)
}
  0x33   :  { %33 = dma.hbm_to_vmem [thread:$0]  %s4718_s0, 64, %s31_s28, [#allocation3]  }
  0x34   :  { %s4347_s17 = scalar_lea.vmem %s53_s30, 128  ;;  %p4352_p7 = scmp.lt.s32.totalorder %s53_s30, %s53_s30 }
  0x35   :  { %p4348_p6 = scmp.ne.s32.totalorder %s53_s30, %s4347_s17  ;;  %p4353_p8 = scmp.lt.s32.totalorder %s4347_s17, %s4347_s17 }
  0x37   :  { %p4354_p9 = por %p4353_p8, %p4352_p7 }
  0x39   :  { %p4355_p10 = pnand %p4354_p9, %p4348_p6 }
  0x3b   :  { %4358 = shalt.err (!%p4355_p10)
}
  0x3c   :  { %55 = dma.hbm_to_vmem [thread:$0]  %s4720_s2, 128, %s53_s30, [#allocation6]  }
  0x3d   :  { %s4462_s19 = smov [#allocation10]  }
  0x3e   :  { %s75_s20 = sshll.u32 %s4462_s19, 4  ;;  %s76_s20 = int_to_ptr.vmem [resolvable:$true] %s75_s20 }
  0x3f   :  { %s4367_s21 = scalar_lea.vmem %s76_s20, 8192  ;;  %p4372_p12 = scmp.lt.s32.totalorder %s76_s20, %s76_s20 }
  0x40   :  { %p4368_p11 = scmp.ne.s32.totalorder %s76_s20, %s4367_s21  ;;  %p4373_p13 = scmp.lt.s32.totalorder %s4367_s21, %s4367_s21 }
  0x42   :  { %p4374_p0 = por %p4373_p13, %p4372_p12 }
  0x44   :  { %p4375_p1 = pnand %p4374_p0, %p4368_p11 }
  0x46   :  { %4378 = shalt.err (!%p4375_p1)
}
  0x47   :  { %s4463_s0 = smov 128   ;;  %s4464_s22 = smov 8  }
  0x48   :  { %81 = dma.hbm_to_vmem [thread:$0]  %s4723_s5, 8192, %s76_s20, [#allocation9], %s4463_s0, %s4463_s0, %s4464_s22  }
  0x49   :  { %s4465_s26 = smov [#allocation13]   ;;  %s4466_s3 = smov [#allocation14]  }
  0x4a   :  { %s103_s27 = sshll.u32 %s4465_s26, 4  ;;  %s117_s2 = sshll.u32 %s4466_s3, 4  ;;  %s104_s27 = int_to_ptr.vmem [resolvable:$true] %s103_s27  ;;  %s118_s2 = int_to_ptr.vmem [resolvable:$true] %s117_s2 }
  0x4b   :  { %s4387_s28 = scalar_lea.vmem %s104_s27, 1024  ;;  %p4392_p3 = scmp.lt.s32.totalorder %s104_s27, %s104_s27 }
  0x4c   :  { %p4388_p2 = scmp.ne.s32.totalorder %s104_s27, %s4387_s28  ;;  %p4393_p4 = scmp.lt.s32.totalorder %s4387_s28, %s4387_s28 }
  0x4e   :  { %p4394_p5 = por %p4393_p4, %p4392_p3 }
  0x50   :  { %p4395_p6 = pnand %p4394_p5, %p4388_p2 }
  0x52   :  { %4398 = shalt.err (!%p4395_p6)
}
  0x53   :  { %109 = dma.hbm_to_vmem [thread:$0]  %s4727_s9, 1024, %s104_s27, [#allocation12], %s4458_s24, %s4458_s24, %s4459_s25  }
  0x54   :  { %s4407_s5 = scalar_lea.vmem %s118_s2, 1024  ;;  %p4412_p8 = scmp.lt.s32.totalorder %s118_s2, %s118_s2 }
  0x55   :  { %p4408_p7 = scmp.ne.s32.totalorder %s118_s2, %s4407_s5  ;;  %p4413_p9 = scmp.lt.s32.totalorder %s4407_s5, %s4407_s5 }
  0x57   :  { %p4414_p10 = por %p4413_p9, %p4412_p8 }
  0x59   :  { %p4415_p11 = pnand %p4414_p10, %p4408_p7 }
  0x5b   :  { %4418 = shalt.err (!%p4415_p11)
}
  0x5c   :  { %123 = dma.hbm_to_vmem [thread:$0]  %s4729_s11, 1024, %s118_s2, [#allocation15], %s4458_s24, %s4458_s24, %s4459_s25  }
  0x5d   :  { %4439 = dma.done.wait [#allocation3], 64  }
  0x5e   :  { %4440 = vsyncadd [#allocation3], 4294967232 }
  0x5f   :  { %4441 = dma.done.wait [#allocation6], 2176  }
  0x60   :  { %4442 = vsyncadd [#allocation6], 4294965120 }
  0x61   :  { %4443 = dma.done.wait [#allocation9], 40960  }
  0x62   :  { %4444 = vsyncadd [#allocation9], 4294926336 }
  0x63   :  { %4445 = dma.done.wait [#allocation12], 3072  }
  0x64   :  { %4446 = vsyncadd [#allocation12], 4294964224 }
  0x65   :  { %4447 = dma.done.wait [#allocation15], 1024  }
  0x66   :  { %4448 = vsyncadd [#allocation15], 4294966272  ;;  %v4467_v0 = vmov 0   ;;  %v160_v1 = vld [vmem:[#allocation5 + $0x40] sm:$0xff]  ;;  %v161_v8 = vld [vmem:[#allocation5 + $0x48] sm:$0xff]  ;;  %vm290_vm0 = vcmask 261120  }
  0x67   :  { %326 = vmatprep.mubr.bf16.mxu1 %v4467_v0  ;;  %v164_v2 = vld [vmem:[#allocation5 + $0x60] sm:$0xff]  ;;  %v165_v9 = vld [vmem:[#allocation5 + $0x68] sm:$0xff]  ;;  %v4575_v17 = vld [vmem:[#allocation2] sm:$0xf]  ;;  %vm4469_vm1 = vmmov 0   ;;  %s4470_s18 = smov [#allocation16]  }
  0x68   :  { %v152_v3 = vld [vmem:[#allocation5] sm:$0xff]  ;;  %v3281_v4 = vcombine.high %v160_v1, %v164_v2  ;;  %v3280_v5 = vcombine.low %v160_v1, %v164_v2  ;;  %v3283_v11 = vcombine.high %v161_v8, %v165_v9  ;;  %v153_v12 = vld [vmem:[#allocation5 + $0x8] sm:$0xff]  ;;  %v3282_v18 = vcombine.low %v161_v8, %v165_v9  ;;  %v162_v21 = vld [vmem:[#allocation5 + $0x50] sm:$0xff]  ;;  %s3259_s19 = sshll.u32 %s4470_s18, 4  ;;  %s3260_s19 = int_to_ptr.vmem [resolvable:$true] %s3259_s19 }
  0x69   :  { %v156_v6 = vld [vmem:[#allocation5 + $0x20] sm:$0xff]  ;;  %v157_v13 = vld [vmem:[#allocation5 + $0x28] sm:$0xff]  ;;  %v166_v22 = vld [vmem:[#allocation5 + $0x70] sm:$0xff]  ;;  %p4424_p13 = scmp.lt.s32.totalorder %s3260_s19, %s3260_s19 }
  0x6a   :  { %v3273_v7 = vcombine.high %v152_v3, %v156_v6  ;;  %306 = vmatprep.subr.bf16.mxu1 %v3281_v4  ;;  %v3272_v10 = vcombine.low %v152_v3, %v156_v6  ;;  %v3747_v14 = vld [vmem:[#allocation8 + $0xe4] ss:$16 sps:$4 sm:$0xff]   ;;  %v3749_v15 = vld [vmem:[#allocation8 + $0xe0] ss:$16 sps:$4 sm:$0xff]   ;;  %v3275_v19 = vcombine.high %v153_v12, %v157_v13  ;;  %v3274_v24 = vcombine.low %v153_v12, %v157_v13  ;;  %v154_v25 = vld [vmem:[#allocation5 + $0x10] sm:$0xff] }
  0x6b   :  { %307 = vmatpush1.bf16.msra.mxu1 %v3280_v5  ;;  %v3750_v16 = vld [vmem:[#allocation8 + $0xc4] ss:$16 sps:$4 sm:$0xff]   ;;  %2032 = vmatprep.subr.bf16.mxu0 %v3747_v14  ;;  %v3752_v20 = vld [vmem:[#allocation8 + $0xc0] ss:$16 sps:$4 sm:$0xff]   ;;  %v3285_v26 = vcombine.high %v162_v21, %v166_v22  ;;  %v158_v27 = vld [vmem:[#allocation5 + $0x30] sm:$0xff]  ;;  %v3284_v30 = vcombine.low %v162_v21, %v166_v22 }
  0x6c   :  { %308 = vmatprep.subr.bf16.mxu1 %v3273_v7  ;;  %2033 = vmatpush1.bf16.msra.mxu0 %v3749_v15  ;;  %v3753_v23 = vld [vmem:[#allocation8 + $0xa4] ss:$16 sps:$4 sm:$0xff]   ;;  %v3758_v28 = vld [vmem:[#allocation8 + $0xa0] ss:$16 sps:$4 sm:$0xff]   ;;  %v3277_v31 = vcombine.high %v154_v25, %v158_v27  ;;  %v3276_v36 = vcombine.low %v154_v25, %v158_v27 }
  0x6d   :  { %2034 = vmatprep.subr.bf16.mxu0 %v3750_v16  ;;  %v3759_v29 = vld [vmem:[#allocation8 + $0x84] ss:$16 sps:$4 sm:$0xff]   ;;  %v3764_v32 = vld [vmem:[#allocation8 + $0x80] ss:$16 sps:$4 sm:$0xff]  }
  0x6e   :  { %v163_v33 = vld [vmem:[#allocation5 + $0x58] sm:$0xff] }
  0x6f   :  { %309 = vmatpush1.bf16.msra.mxu1 %v3272_v10  ;;  %v167_v34 = vld [vmem:[#allocation5 + $0x78] sm:$0xff] }
  0x70   :  { %347 = vmatprep.subr.bf16.mxu1 %v3283_v11  ;;  %2035 = vmatpush1.bf16.msra.mxu0 %v3752_v20  ;;  %v3765_v35 = vld [vmem:[#allocation8 + $0x64] ss:$16 sps:$4 sm:$0xff]   ;;  %v3287_v38 = vcombine.high %v163_v33, %v167_v34  ;;  %v3770_v40 = vld [vmem:[#allocation8 + $0x60] ss:$16 sps:$4 sm:$0xff]   ;;  %v3286_v42 = vcombine.low %v163_v33, %v167_v34 }
  0x71   :  { %2036 = vmatprep.subr.bf16.mxu0 %v3753_v23  ;;  %v155_v37 = vld [vmem:[#allocation5 + $0x18] sm:$0xff] }
  0x72   :  { %3288 = vmatmul.mubr.msk.bf16.vlgmr.msra.gmra.mxu1 %vm290_vm0, %v4575_v17  ;;  %v159_v39 = vld [vmem:[#allocation5 + $0x38] sm:$0xff] }
  0x73   :  { %348 = vmatpush1.bf16.msra.mxu1 %v3282_v18  ;;  %367 = vmatprep.mubr.bf16.mxu1 %v4467_v0  ;;  %v3771_v41 = vld [vmem:[#allocation8 + $0x44] ss:$16 sps:$4 sm:$0xff]   ;;  %v3279_v43 = vcombine.high %v155_v37, %v159_v39  ;;  %v3776_v44 = vld [vmem:[#allocation8 + $0x40] ss:$16 sps:$4 sm:$0xff]   ;;  %v3278_v46 = vcombine.low %v155_v37, %v159_v39  ;;  %v4593_v39 = vld [vmem:[#allocation7] sm:$0xff] }
  0x74   :  { %349 = vmatprep.subr.bf16.mxu1 %v3275_v19  ;;  %2037 = vmatpush1.bf16.msra.mxu0 %v3758_v28  ;;  %v3777_v45 = vld [vmem:[#allocation8 + $0x24] ss:$16 sps:$4 sm:$0xff]   ;;  %v3782_v48 = vld [vmem:[#allocation8 + $0x20] ss:$16 sps:$4 sm:$0xff]  }
  0x75   :  { %2038 = vmatprep.subr.bf16.mxu0 %v3759_v29  ;;  %v3757_v47 = vld [vmem:[#allocation8 + $0x2e4] ss:$16 sps:$4 sm:$0xff]   ;;  %v3755_v50 = vld [vmem:[#allocation8 + $0x2e0] ss:$16 sps:$4 sm:$0xff]  }
  0x76   :  { %v3783_v49 = vld [vmem:[#allocation8 + $0x4] ss:$16 sps:$4 sm:$0xff]   ;;  %v3788_v52 = vld [vmem:[#allocation8] ss:$16 sps:$4 sm:$0xff]  }
  0x77   :  { %350 = vmatpush1.bf16.msra.mxu1 %v3274_v24  ;;  %v3763_v51 = vld [vmem:[#allocation8 + $0x2c4] ss:$16 sps:$4 sm:$0xff]   ;;  %v3761_v54 = vld [vmem:[#allocation8 + $0x2c0] ss:$16 sps:$4 sm:$0xff]  }
  0x78   :  { %388 = vmatprep.subr.bf16.mxu1 %v3285_v26  ;;  %2039 = vmatpush1.bf16.msra.mxu0 %v3764_v32  ;;  %v3789_v53 = vld [vmem:[#allocation8 + $0x1e4] ss:$16 sps:$4 sm:$0xff]   ;;  %v3794_v56 = vld [vmem:[#allocation8 + $0x1e0] ss:$16 sps:$4 sm:$0xff]  }
  0x79   :  { %2040 = vmatprep.subr.bf16.mxu0 %v3765_v35  ;;  %v3769_v55 = vld [vmem:[#allocation8 + $0x2a4] ss:$16 sps:$4 sm:$0xff]   ;;  %v3767_v58 = vld [vmem:[#allocation8 + $0x2a0] ss:$16 sps:$4 sm:$0xff]  }
  0x7a   :  { %3289 = vmatmul.mubr.msk.bf16.vlgmr.msra.gmra.mxu1 %vm290_vm0, %v4575_v17  ;;  %v3795_v57 = vld [vmem:[#allocation8 + $0x1c4] ss:$16 sps:$4 sm:$0xff]   ;;  %v3800_v60 = vld [vmem:[#allocation8 + $0x1c0] ss:$16 sps:$4 sm:$0xff]  }
  0x7b   :  { %389 = vmatpush1.bf16.msra.mxu1 %v3284_v30  ;;  %408 = vmatprep.mubr.bf16.mxu1 %v4467_v0  ;;  %v3775_v59 = vld [vmem:[#allocation8 + $0x284] ss:$16 sps:$4 sm:$0xff]   ;;  %v3773_v62 = vld [vmem:[#allocation8 + $0x280] ss:$16 sps:$4 sm:$0xff]  }
  0x7c   :  { %390 = vmatprep.subr.bf16.mxu1 %v3277_v31  ;;  %2041 = vmatpush1.bf16.msra.mxu0 %v3770_v40  ;;  %v3801_v61 = vld [vmem:[#allocation8 + $0x1a4] ss:$16 sps:$4 sm:$0xff]   ;;  %v3779_v2 = vld [vmem:[#allocation8 + $0x260] ss:$16 sps:$4 sm:$0xff]  }
  0x7d   :  { %2042 = vmatprep.subr.bf16.mxu0 %v3771_v41  ;;  %v3781_v63 = vld [vmem:[#allocation8 + $0x264] ss:$16 sps:$4 sm:$0xff]   ;;  %v3812_v4 = vld [vmem:[#allocation8 + $0x180] ss:$16 sps:$4 sm:$0xff]  }
  0x7e   :  { %v3807_v1 = vld [vmem:[#allocation8 + $0x184] ss:$16 sps:$4 sm:$0xff]   ;;  %v3785_v6 = vld [vmem:[#allocation8 + $0x240] ss:$16 sps:$4 sm:$0xff]  }
  0x7f   :  { %391 = vmatpush1.bf16.msra.mxu1 %v3276_v36  ;;  %v3787_v3 = vld [vmem:[#allocation8 + $0x244] ss:$16 sps:$4 sm:$0xff]   ;;  %v3818_v8 = vld [vmem:[#allocation8 + $0x160] ss:$16 sps:$4 sm:$0xff]   ;;  %v170_v36 = vlaneseq }
  0x80   :  { %429 = vmatprep.subr.bf16.mxu1 %v3287_v38  ;;  %2043 = vmatpush1.bf16.msra.mxu0 %v3776_v44  ;;  %v3813_v5 = vld [vmem:[#allocation8 + $0x164] ss:$16 sps:$4 sm:$0xff]   ;;  %v3791_v10 = vld [vmem:[#allocation8 + $0x220] ss:$16 sps:$4 sm:$0xff]  }
  0x81   :  { %2044 = vmatprep.subr.bf16.mxu0 %v3777_v45  ;;  %v3793_v7 = vld [vmem:[#allocation8 + $0x224] ss:$16 sps:$4 sm:$0xff]   ;;  %v3824_v12 = vld [vmem:[#allocation8 + $0x140] ss:$16 sps:$4 sm:$0xff]   ;;  %v4588_v37 = vshrl.u32 %v170_v36, 7 }
  0x82   :  { %3290 = vmatmul.mubr.msk.bf16.vlgmr.msra.gmra.mxu1 %vm290_vm0, %v4575_v17  ;;  %v3819_v9 = vld [vmem:[#allocation8 + $0x144] ss:$16 sps:$4 sm:$0xff]   ;;  %v3797_v13 = vld [vmem:[#allocation8 + $0x200] ss:$16 sps:$4 sm:$0xff]  }
  0x83   :  { %430 = vmatpush1.bf16.msra.mxu1 %v3286_v42  ;;  %449 = vmatprep.mubr.bf16.mxu1 %v4467_v0  ;;  %v3806_v0 = vld [vmem:[#allocation8 + $0x1a0] ss:$16 sps:$4 sm:$0xff]   ;;  %v3799_v11 = vld [vmem:[#allocation8 + $0x204] ss:$16 sps:$4 sm:$0xff]   ;;  %v4591_v38 = vsub.s32 0, %v4588_v37  ;;  %v4596_v40 = vsub.s32 1, %v4588_v37 }
  0x84   :  { %431 = vmatprep.subr.bf16.mxu1 %v3279_v43  ;;  %2045 = vmatpush1.bf16.msra.mxu0 %v3782_v48  ;;  %v3805_v14 = vld [vmem:[#allocation8 + $0x3e4] ss:$16 sps:$4 sm:$0xff]   ;;  %v3803_v15 = vld [vmem:[#allocation8 + $0x3e0] ss:$16 sps:$4 sm:$0xff]   ;;  %v180_v45 = vsub.s32 2, %v4588_v37  ;;  %v184_v48 = vsub.s32 3, %v4588_v37 }
  0x85   :  { %2046 = vmatprep.subr.bf16.mxu0 %v3783_v49  ;;  %v3811_v16 = vld [vmem:[#allocation8 + $0x3c4] ss:$16 sps:$4 sm:$0xff]   ;;  %v3815_v19 = vld [vmem:[#allocation8 + $0x3a0] ss:$16 sps:$4 sm:$0xff]   ;;  %v173_v41 = vrot.slane %v4593_v39, %v4591_v38  ;;  %v177_v42 = vrot.slane %v4593_v39, %v4596_v40 }
  0x86   :  { %v3817_v18 = vld [vmem:[#allocation8 + $0x3a4] ss:$16 sps:$4 sm:$0xff]   ;;  %v3821_v21 = vld [vmem:[#allocation8 + $0x380] ss:$16 sps:$4 sm:$0xff]  }
  0x87   :  { %432 = vmatpush1.bf16.msra.mxu1 %v3278_v46  ;;  %v3823_v20 = vld [vmem:[#allocation8 + $0x384] ss:$16 sps:$4 sm:$0xff]   ;;  %v3830_v24 = vld [vmem:[#allocation8 + $0x120] ss:$16 sps:$4 sm:$0xff]  }
  0x88   :  { %2073 = vmatprep.subr.bf16.mxu1 %v3757_v47  ;;  %2047 = vmatpush1.bf16.msra.mxu0 %v3788_v52  ;;  %v3825_v22 = vld [vmem:[#allocation8 + $0x124] ss:$16 sps:$4 sm:$0xff]   ;;  %v3827_v25 = vld [vmem:[#allocation8 + $0x360] ss:$16 sps:$4 sm:$0xff]   ;;  %v181_v52 = vrot.slane %v4593_v39, %v180_v45 }
  0x89   :  { %2048 = vmatprep.subr.bf16.mxu0 %v3789_v53  ;;  %v3829_v23 = vld [vmem:[#allocation8 + $0x364] ss:$16 sps:$4 sm:$0xff]   ;;  %v3836_v28 = vld [vmem:[#allocation8 + $0x100] ss:$16 sps:$4 sm:$0xff]  }
  0x8a   :  { %3291 = vmatmul.mubr.msk.bf16.vlgmr.msra.gmra.mxu1 %vm290_vm0, %v4575_v17  ;;  %v3809_v17 = vld [vmem:[#allocation8 + $0x3c0] ss:$16 sps:$4 sm:$0xff]   ;;  %v3831_v26 = vld [vmem:[#allocation8 + $0x104] ss:$16 sps:$4 sm:$0xff]  }
  0x8b   :  { %2074 = vmatpush1.bf16.msra.mxu1 %v3755_v50  ;;  %v3835_v27 = vld [vmem:[#allocation8 + $0x344] ss:$16 sps:$4 sm:$0xff]   ;;  %v3833_v30 = vld [vmem:[#allocation8 + $0x340] ss:$16 sps:$4 sm:$0xff]  }
  0x8c   :  { %2075 = vmatprep.subr.bf16.mxu1 %v3763_v51  ;;  %2049 = vmatpush2.bf16.msra.mxu0 %v3794_v56  ;;  %v3842_v29 = vld [vmem:[#allocation8 + $0x4e4] ss:$16 sps:$4 sm:$0xff]   ;;  %v3837_v32 = vld [vmem:[#allocation8 + $0x320] ss:$16 sps:$4 sm:$0xff]   ;;  %v185_v56 = vrot.slane %v4593_v39, %v184_v48 }
  0x8d   :  { %2050 = vmatprep.subr.bf16.mxu0 %v3795_v57  ;;  %v3839_v31 = vld [vmem:[#allocation8 + $0x324] ss:$16 sps:$4 sm:$0xff]   ;;  %v3843_v34 = vld [vmem:[#allocation8 + $0x300] ss:$16 sps:$4 sm:$0xff]  }
  0x8e   :  { %v3845_v33 = vld [vmem:[#allocation8 + $0x304] ss:$16 sps:$4 sm:$0xff]  }
  0x8f   :  { %2076 = vmatpush1.bf16.msra.mxu1 %v3761_v54  ;;  %v3854_v35 = vld [vmem:[#allocation8 + $0x6e4] ss:$16 sps:$4 sm:$0xff]  }
  0x90   :  { %2077 = vmatprep.subr.bf16.mxu1 %v3769_v55  ;;  %2051 = vmatpush2.bf16.msra.mxu0 %v3800_v60  ;;  %v3840_v55 = vld [vmem:[#allocation8 + $0x4e0] ss:$16 sps:$4 sm:$0xff]   ;;  %v3878_v36 = vld [vmem:[#allocation8 + $0x664] ss:$16 sps:$4 sm:$0xff]  }
  0x91   :  { %2052 = vmatprep.subr.bf16.mxu0 %v3801_v61 }
  0x93   :  { %2078 = vmatpush1.bf16.msra.mxu1 %v3767_v58 }
  0x94   :  { %2079 = vmatprep.subr.bf16.mxu1 %v3775_v59  ;;  %2053 = vmatpush2.bf16.msra.mxu0 %v3806_v0  ;;  %v3848_v59 = vld [vmem:[#allocation8 + $0x4c4] ss:$16 sps:$4 sm:$0xff]   ;;  %v192_v0 = vsub.s32 5, %v4588_v37 }
  0x95   :  { %2054 = vmatprep.subr.bf16.mxu0 %v3807_v1 }
  0x97   :  { %2080 = vmatpush1.bf16.msra.mxu1 %v3773_v62 }
  0x98   :  { %2081 = vmatprep.subr.bf16.mxu1 %v3781_v63  ;;  %2055 = vmatpush2.bf16.msra.mxu0 %v3812_v4  ;;  %v3846_v63 = vld [vmem:[#allocation8 + $0x4c0] ss:$16 sps:$4 sm:$0xff]  }
  0x99   :  { %2056 = vmatprep.subr.bf16.mxu0 %v3813_v5 }
  0x9b   :  { %2082 = vmatpush1.bf16.msra.mxu1 %v3779_v2 }
  0x9c   :  { %2083 = vmatprep.subr.bf16.mxu1 %v3787_v3  ;;  %2057 = vmatpush2.bf16.msra.mxu0 %v3818_v8  ;;  %v3851_v3 = vld [vmem:[#allocation8 + $0x4a4] ss:$16 sps:$4 sm:$0xff]   ;;  %v3852_v8 = vld [vmem:[#allocation8 + $0x6e0] ss:$16 sps:$4 sm:$0xff]  }
  0x9d   :  { %2058 = vmatprep.subr.bf16.mxu0 %v3819_v9  ;;  %v193_v9 = vrot.slane %v4593_v39, %v192_v0  ;;  %v3902_v0 = vld [vmem:[#allocation8 + $0x7e4] ss:$16 sps:$4 sm:$0xff]  }
  0x9f   :  { %2084 = vmatpush1.bf16.msra.mxu1 %v3785_v6 }
  0xa0   :  { %2085 = vmatprep.subr.bf16.mxu1 %v3793_v7  ;;  %2059 = vmatpush2.bf16.msra.mxu0 %v3824_v12  ;;  %v3849_v7 = vld [vmem:[#allocation8 + $0x4a0] ss:$16 sps:$4 sm:$0xff]   ;;  %v3860_v12 = vld [vmem:[#allocation8 + $0x6c4] ss:$16 sps:$4 sm:$0xff]  }
  0xa1   :  { %2060 = vmatprep.subr.bf16.mxu0 %v3825_v22 }
  0xa3   :  { %2086 = vmatpush1.bf16.msra.mxu1 %v3791_v10 }
  0xa4   :  { %2087 = vmatprep.subr.bf16.mxu1 %v3799_v11  ;;  %2061 = vmatpush2.bf16.msra.mxu0 %v3830_v24  ;;  %v3857_v11 = vld [vmem:[#allocation8 + $0x484] ss:$16 sps:$4 sm:$0xff]   ;;  %v3861_v24 = vld [vmem:[#allocation8 + $0x460] ss:$16 sps:$4 sm:$0xff]  }
  0xa5   :  { %2062 = vmatprep.subr.bf16.mxu0 %v3831_v26 }
  0xa7   :  { %2088 = vmatpush1.bf16.msra.mxu1 %v3797_v13 }
  0xa8   :  { %2089 = vmatprep.subr.bf16.mxu1 %v3805_v14  ;;  %2063 = vmatpush2.bf16.msra.mxu0 %v3836_v28  ;;  %v3869_v28 = vld [vmem:[#allocation8 + $0x444] ss:$16 sps:$4 sm:$0xff]  }
  0xa9   :  { %2114 = vmatprep.subr.bf16.mxu0 %v3842_v29  ;;  %v3872_v29 = vld [vmem:[#allocation8 + $0x684] ss:$16 sps:$4 sm:$0xff]  }
  0xab   :  { %2090 = vmatpush2.bf16.msra.mxu1 %v3803_v15  ;;  %v3855_v15 = vld [vmem:[#allocation8 + $0x480] ss:$16 sps:$4 sm:$0xff]  }
  0xac   :  { %2091 = vmatprep.subr.bf16.mxu1 %v3811_v16  ;;  %v3858_v16 = vld [vmem:[#allocation8 + $0x6c0] ss:$16 sps:$4 sm:$0xff]  }
  0xaf   :  { %2092 = vmatpush2.bf16.msra.mxu1 %v3809_v17 }
  0xb0   :  { %2093 = vmatprep.subr.bf16.mxu1 %v3817_v18  ;;  %v200_v18 = vsub.s32 7, %v4588_v37 }
  0xb3   :  { %2094 = vmatpush2.bf16.msra.mxu1 %v3815_v19  ;;  %v3863_v19 = vld [vmem:[#allocation8 + $0x464] ss:$16 sps:$4 sm:$0xff]  }
  0xb4   :  { %2095 = vmatprep.subr.bf16.mxu1 %v3823_v20  ;;  %v3866_v20 = vld [vmem:[#allocation8 + $0x6a4] ss:$16 sps:$4 sm:$0xff]  }
  0xb7   :  { %2096 = vmatpush2.bf16.msra.mxu1 %v3821_v21 }
  0xb8   :  { %2097 = vmatprep.subr.bf16.mxu1 %v3829_v23 }
  0xbb   :  { %2098 = vmatpush2.bf16.msra.mxu1 %v3827_v25  ;;  %v3864_v25 = vld [vmem:[#allocation8 + $0x6a0] ss:$16 sps:$4 sm:$0xff]  }
  0xbc   :  { %2099 = vmatprep.subr.bf16.mxu1 %v3835_v27  ;;  %v201_v27 = vrot.slane %v4593_v39, %v200_v18  ;;  %v3918_v18 = vld [vmem:[#allocation8 + $0x780] ss:$16 sps:$4 sm:$0xff]  }
  0xbf   :  { %2100 = vmatpush2.bf16.msra.mxu1 %v3833_v30 }
  0xc0   :  { %2101 = vmatprep.subr.bf16.mxu1 %v3839_v31 }
  0xc3   :  { %2102 = vmatpush2.bf16.msra.mxu1 %v3837_v32  ;;  %v3867_v32 = vld [vmem:[#allocation8 + $0x440] ss:$16 sps:$4 sm:$0xff]  }
  0xc4   :  { %2103 = vmatprep.subr.bf16.mxu1 %v3845_v33  ;;  %v3870_v33 = vld [vmem:[#allocation8 + $0x680] ss:$16 sps:$4 sm:$0xff]  }
  0xc7   :  { %2104 = vmatpush2.bf16.msra.mxu1 %v3843_v34 }
  0xc8   :  { %2155 = vmatprep.subr.bf16.mxu1 %v3854_v35  ;;  %v3875_v35 = vld [vmem:[#allocation8 + $0x424] ss:$16 sps:$4 sm:$0xff]  }
 0x132   :  { %v328_v43 = vpop.f32.mrf.mxu1 }
 0x133   :  { %v329_v44 = vadd.f32 %v328_v43, %v173_v41 }
 0x134   :  { %v330_v46 = vpop.f32.mrf.mxu1 }
 0x135   :  { %v331_v47 = vadd.f32 %v330_v46, %v177_v42  ;;  %v458_v49 = vmax.f32 %v329_v44, 0.0  ;;  %v3873_v44 = vld [vmem:[#allocation8 + $0x420] ss:$16 sps:$4 sm:$0xff]  }
 0x136   :  { %v332_v50 = vpop.f32.mrf.mxu1  ;;  %v3876_v46 = vld [vmem:[#allocation8 + $0x660] ss:$16 sps:$4 sm:$0xff]  }
 0x137   :  { %v459_v51 = vmax.f32 %v331_v47, 0.0  ;;  %v4612_v57 = vpack.c.bf16 %v458_v49, %v458_v49  ;;  %v3881_v49 = vld [vmem:[#allocation8 + $0x404] ss:$16 sps:$4 sm:$0xff]  }
 0x138   :  { %v333_v53 = vpop.f32.mrf.mxu1  ;;  %v3884_v50 = vld [vmem:[#allocation8 + $0x644] ss:$16 sps:$4 sm:$0xff]  }
 0x139   :  { %v4607_v54 = vpack.c.bf16 %v459_v51, %v459_v51  ;;  %v3879_v51 = vld [vmem:[#allocation8 + $0x400] ss:$16 sps:$4 sm:$0xff]   ;;  %v3887_v53 = vld [vmem:[#allocation8 + $0x5e4] ss:$16 sps:$4 sm:$0xff]  }
 0x13a   :  { %v369_v58 = vpop.f32.mrf.mxu1 }
 0x13b   :  { %v370_v60 = vadd.f32 %v369_v58, %v181_v52  ;;  %2064 = vmatprep.mubr.bf16.mxu0 %v4607_v54  ;;  %v3882_v52 = vld [vmem:[#allocation8 + $0x640] ss:$16 sps:$4 sm:$0xff]  }
 0x13c   :  { %v371_v61 = vpop.f32.mrf.mxu1  ;;  %2065 = vmatmul.mubr.bf16.vlgmr.msra.gmra.mxu0 %v4612_v57  ;;  %v3888_v58 = vld [vmem:[#allocation8 + $0x620] ss:$16 sps:$4 sm:$0xff]  }
 0x13d   :  { %v372_v62 = vadd.f32 %v371_v61, %v185_v56  ;;  %2115 = vmatpush1.bf16.msra.mxu0 %v3840_v55  ;;  %v460_v1 = vmax.f32 %v370_v60, 0.0  ;;  %v3890_v55 = vld [vmem:[#allocation8 + $0x624] ss:$16 sps:$4 sm:$0xff]   ;;  %v3885_v56 = vld [vmem:[#allocation8 + $0x5e0] ss:$16 sps:$4 sm:$0xff]  }
 0x13e   :  { %v373_v2 = vpop.f32.mrf.mxu1  ;;  %2116 = vmatprep.subr.bf16.mxu0 %v3848_v59  ;;  %v3893_v59 = vld [vmem:[#allocation8 + $0x5c4] ss:$16 sps:$4 sm:$0xff]   ;;  %v3891_v61 = vld [vmem:[#allocation8 + $0x5c0] ss:$16 sps:$4 sm:$0xff]  }
 0x13f   :  { %v461_v4 = vmax.f32 %v372_v62, 0.0  ;;  %v4620_v10 = vpack.c.bf16 %v460_v1, %v460_v1  ;;  %v3896_v60 = vld [vmem:[#allocation8 + $0x604] ss:$16 sps:$4 sm:$0xff]   ;;  %v3894_v62 = vld [vmem:[#allocation8 + $0x600] ss:$16 sps:$4 sm:$0xff]  }
 0x140   :  { %v374_v5 = vpop.f32.mrf.mxu1  ;;  %v3897_v1 = vld [vmem:[#allocation8 + $0x5a0] ss:$16 sps:$4 sm:$0xff]  }
 0x141   :  { %v4617_v6 = vpack.c.bf16 %v461_v4, %v461_v4  ;;  %2117 = vmatpush1.bf16.msra.mxu0 %v3846_v63  ;;  %v3899_v63 = vld [vmem:[#allocation8 + $0x5a4] ss:$16 sps:$4 sm:$0xff]   ;;  %v3900_v2 = vld [vmem:[#allocation8 + $0x7e0] ss:$16 sps:$4 sm:$0xff]  }
 0x142   :  { %2118 = vmatprep.subr.bf16.mxu0 %v3851_v3  ;;  %v4622_v13 = vpop.f32.mrf.mxu1  ;;  %v3905_v3 = vld [vmem:[#allocation8 + $0x584] ss:$16 sps:$4 sm:$0xff]   ;;  %v3903_v5 = vld [vmem:[#allocation8 + $0x580] ss:$16 sps:$4 sm:$0xff]  }
 0x143   :  { %2105 = vmatprep.mubr.bf16.mxu1 %v4617_v6  ;;  %v3908_v4 = vld [vmem:[#allocation8 + $0x7c4] ss:$16 sps:$4 sm:$0xff]  }
 0x144   :  { %2106 = vmatmul.mubr.bf16.vlgmr.msra.gmra.mxu1 %v4620_v10  ;;  %v412_v14 = vpop.f32.mrf.mxu1 }
 0x145   :  { %2119 = vmatpush1.bf16.msra.mxu0 %v3849_v7  ;;  %2156 = vmatpush1.bf16.msra.mxu1 %v3852_v8  ;;  %v413_v17 = vadd.f32 %v412_v14, %v193_v9  ;;  %v3906_v7 = vld [vmem:[#allocation8 + $0x7c0] ss:$16 sps:$4 sm:$0xff]   ;;  %v3911_v8 = vld [vmem:[#allocation8 + $0x564] ss:$16 sps:$4 sm:$0xff]   ;;  %v188_v14 = vsub.s32 4, %v4588_v37 }
 0x146   :  { %2120 = vmatprep.subr.bf16.mxu0 %v3857_v11  ;;  %2157 = vmatprep.subr.bf16.mxu1 %v3860_v12  ;;  %v414_v21 = vpop.f32.mrf.mxu1  ;;  %v3914_v9 = vld [vmem:[#allocation8 + $0x7a4] ss:$16 sps:$4 sm:$0xff]   ;;  %v3909_v11 = vld [vmem:[#allocation8 + $0x560] ss:$16 sps:$4 sm:$0xff]  }
 0x147   :  { %v463_v22 = vmax.f32 %v413_v17, 0.0  ;;  %v3912_v12 = vld [vmem:[#allocation8 + $0x7a0] ss:$16 sps:$4 sm:$0xff]   ;;  %v3926_v21 = vld [vmem:[#allocation8 + $0x764] ss:$16 sps:$4 sm:$0xff]  }
 0x148   :  { %v415_v23 = vpop.f32.mrf.mxu1  ;;  %v3915_v17 = vld [vmem:[#allocation8 + $0x540] ss:$16 sps:$4 sm:$0xff]  }
 0x149   :  { %2121 = vmatpush1.bf16.msra.mxu0 %v3855_v15  ;;  %2158 = vmatpush1.bf16.msra.mxu1 %v3858_v16  ;;  %v4627_v26 = vpack.c.bf16 %v463_v22, %v463_v22  ;;  %v3917_v15 = vld [vmem:[#allocation8 + $0x544] ss:$16 sps:$4 sm:$0xff]   ;;  %v3921_v22 = vld [vmem:[#allocation8 + $0x520] ss:$16 sps:$4 sm:$0xff]  }
 0x14a   :  { %2122 = vmatprep.subr.bf16.mxu0 %v3863_v19  ;;  %2159 = vmatprep.subr.bf16.mxu1 %v3866_v20  ;;  %v4630_v30 = vpop.f32.mrf.mxu1  ;;  %v3920_v16 = vld [vmem:[#allocation8 + $0x784] ss:$16 sps:$4 sm:$0xff]   ;;  %v189_v19 = vrot.slane %v4593_v39, %v188_v14  ;;  %v3924_v23 = vld [vmem:[#allocation8 + $0x760] ss:$16 sps:$4 sm:$0xff]   ;;  %v3986_v14 = vld [vmem:[#allocation8 + $0x22c] ss:$16 sps:$4 sm:$0xff]  }
 0x14b   :  { %2146 = vmatprep.mubr.bf16.mxu0 %v4627_v26  ;;  %v3923_v20 = vld [vmem:[#allocation8 + $0x524] ss:$16 sps:$4 sm:$0xff]  }
 0x14c   :  { %v453_v31 = vpop.f32.mrf.mxu1 }
 0x14d   :  { %2123 = vmatpush1.bf16.msra.mxu0 %v3861_v24  ;;  %2160 = vmatpush1.bf16.msra.mxu1 %v3864_v25  ;;  %v454_v34 = vadd.f32 %v453_v31, %v201_v27  ;;  %v411_v24 = vadd.f32 %v4622_v13, %v189_v19  ;;  %v196_v25 = vsub.s32 6, %v4588_v37  ;;  %v3929_v27 = vld [vmem:[#allocation8 + $0x504] ss:$16 sps:$4 sm:$0xff]   ;;  %v3930_v31 = vld [vmem:[#allocation8 + $0x740] ss:$16 sps:$4 sm:$0xff]  }
 0x14e   :  { %2124 = vmatprep.subr.bf16.mxu0 %v3869_v28  ;;  %2161 = vmatprep.subr.bf16.mxu1 %v3872_v29  ;;  %v455_v41 = vpop.f32.mrf.mxu1  ;;  %v3932_v28 = vld [vmem:[#allocation8 + $0x744] ss:$16 sps:$4 sm:$0xff]   ;;  %v3927_v29 = vld [vmem:[#allocation8 + $0x500] ss:$16 sps:$4 sm:$0xff]   ;;  %v3987_v19 = vld [vmem:[#allocation8 + $0x1c8] ss:$16 sps:$4 sm:$0xff]  }
 0x14f   :  { %v465_v42 = vmax.f32 %v454_v34, 0.0  ;;  %v3935_v34 = vld [vmem:[#allocation8 + $0x724] ss:$16 sps:$4 sm:$0xff]   ;;  %v3933_v13 = vld [vmem:[#allocation8 + $0x720] ss:$16 sps:$4 sm:$0xff]  }
 0x150   :  { %v456_v43 = vpop.f32.mrf.mxu1 }
 0x151   :  { %2125 = vmatpush1.bf16.msra.mxu0 %v3867_v32  ;;  %2162 = vmatpush1.bf16.msra.mxu1 %v3870_v33  ;;  %v4633_v47 = vpack.c.bf16 %v465_v42, %v465_v42  ;;  %v462_v32 = vmax.f32 %v411_v24, 0.0  ;;  %v197_v33 = vrot.slane %v4593_v39, %v196_v25  ;;  %v3941_v43 = vld [vmem:[#allocation8 + $0x704] ss:$16 sps:$4 sm:$0xff]   ;;  %v3939_v39 = vld [vmem:[#allocation8 + $0x700] ss:$16 sps:$4 sm:$0xff]  }
 0x152   :  { %2126 = vmatprep.subr.bf16.mxu0 %v3875_v35  ;;  %2163 = vmatprep.subr.bf16.mxu1 %v3878_v36  ;;  %v3938_v35 = vld [vmem:[#allocation8 + $0xec] ss:$16 sps:$4 sm:$0xff]   ;;  %v3936_v36 = vld [vmem:[#allocation8 + $0xe8] ss:$16 sps:$4 sm:$0xff]  }
 0x153   :  { %2187 = vmatprep.mubr.bf16.mxu1 %v4633_v47  ;;  %v4641_v41 = vpack.c.bf16 %v462_v32, %v462_v32  ;;  %v452_v42 = vadd.f32 %v4630_v30, %v197_v33  ;;  %v3945_v30 = vld [vmem:[#allocation8 + $0xa8] ss:$16 sps:$4 sm:$0xff]   ;;  %v4001_v25 = vld [vmem:[#allocation8 + $0x18c] ss:$16 sps:$4 sm:$0xff]  }
 0x154   :  { %v3996_v24 = vld [vmem:[#allocation8 + $0x3e8] ss:$16 sps:$4 sm:$0xff]   ;;  %v4010_v32 = vld [vmem:[#allocation8 + $0x3ac] ss:$16 sps:$4 sm:$0xff]  }
 0x155   :  { %2127 = vmatpush1.bf16.msra.mxu0 %v3873_v44  ;;  %2164 = vmatpush1.bf16.msra.mxu1 %v3876_v46  ;;  %v3944_v44 = vld [vmem:[#allocation8 + $0xcc] ss:$16 sps:$4 sm:$0xff]   ;;  %v3942_v46 = vld [vmem:[#allocation8 + $0xc8] ss:$16 sps:$4 sm:$0xff]  }
 0x156   :  { %2128 = vmatprep.subr.bf16.mxu0 %v3881_v49  ;;  %2165 = vmatprep.subr.bf16.mxu1 %v3884_v50  ;;  %v464_v49 = vmax.f32 %v452_v42, 0.0  ;;  %v3947_v50 = vld [vmem:[#allocation8 + $0xac] ss:$16 sps:$4 sm:$0xff]   ;;  %v4005_v33 = vld [vmem:[#allocation8 + $0x168] ss:$16 sps:$4 sm:$0xff]  }
 0x157   :  { %v4014_v42 = vld [vmem:[#allocation8 + $0x388] ss:$16 sps:$4 sm:$0xff]  }
 0x159   :  { %2129 = vmatpush1.bf16.msra.mxu0 %v3879_v51  ;;  %2166 = vmatpush1.bf16.msra.mxu1 %v3882_v52  ;;  %v3950_v51 = vld [vmem:[#allocation8 + $0x2ec] ss:$16 sps:$4 sm:$0xff]   ;;  %v3948_v52 = vld [vmem:[#allocation8 + $0x2e8] ss:$16 sps:$4 sm:$0xff]  }
 0x15a   :  { %2130 = vmatprep.subr.bf16.mxu0 %v3887_v53  ;;  %2167 = vmatprep.subr.bf16.mxu1 %v3890_v55  ;;  %v4646_v53 = vpack.c.bf16 %v464_v49, %v464_v49  ;;  %v3953_v55 = vld [vmem:[#allocation8 + $0x8c] ss:$16 sps:$4 sm:$0xff]  }
 0x15b   :  { %v4025_v49 = vld [vmem:[#allocation8 + $0x10c] ss:$16 sps:$4 sm:$0xff]  }
 0x15d   :  { %2131 = vmatpush2.bf16.msra.mxu0 %v3885_v56  ;;  %2168 = vmatpush1.bf16.msra.mxu1 %v3888_v58  ;;  %v3956_v56 = vld [vmem:[#allocation8 + $0x2cc] ss:$16 sps:$4 sm:$0xff]   ;;  %v3951_v58 = vld [vmem:[#allocation8 + $0x88] ss:$16 sps:$4 sm:$0xff]  }
 0x15e   :  { %2132 = vmatprep.subr.bf16.mxu0 %v3893_v59  ;;  %2169 = vmatprep.subr.bf16.mxu1 %v3896_v60  ;;  %v3959_v59 = vld [vmem:[#allocation8 + $0x6c] ss:$16 sps:$4 sm:$0xff]  }
 0x15f   :  { %v3962_v60 = vld [vmem:[#allocation8 + $0x2ac] ss:$16 sps:$4 sm:$0xff]  }
 0x161   :  { %2133 = vmatpush2.bf16.msra.mxu0 %v3891_v61  ;;  %2170 = vmatpush1.bf16.msra.mxu1 %v3894_v62  ;;  %v3957_v61 = vld [vmem:[#allocation8 + $0x68] ss:$16 sps:$4 sm:$0xff]  }
 0x162   :  { %2134 = vmatprep.subr.bf16.mxu0 %v3899_v63  ;;  %2171 = vmatprep.subr.bf16.mxu1 %v3902_v0  ;;  %v3960_v62 = vld [vmem:[#allocation8 + $0x2a8] ss:$16 sps:$4 sm:$0xff]   ;;  %v3965_v63 = vld [vmem:[#allocation8 + $0x4c] ss:$16 sps:$4 sm:$0xff]  }
 0x163   :  { %v3968_v0 = vld [vmem:[#allocation8 + $0x28c] ss:$16 sps:$4 sm:$0xff]  }
 0x165   :  { %2135 = vmatpush2.bf16.msra.mxu0 %v3897_v1  ;;  %2172 = vmatpush2.bf16.msra.mxu1 %v3900_v2  ;;  %v3963_v1 = vld [vmem:[#allocation8 + $0x48] ss:$16 sps:$4 sm:$0xff]  }
 0x166   :  { %2136 = vmatprep.subr.bf16.mxu0 %v3905_v3  ;;  %2173 = vmatprep.subr.bf16.mxu1 %v3908_v4  ;;  %v3966_v2 = vld [vmem:[#allocation8 + $0x288] ss:$16 sps:$4 sm:$0xff]   ;;  %v3971_v3 = vld [vmem:[#allocation8 + $0x2c] ss:$16 sps:$4 sm:$0xff]  }
 0x167   :  { %v3969_v4 = vld [vmem:[#allocation8 + $0x28] ss:$16 sps:$4 sm:$0xff]  }
 0x169   :  { %2137 = vmatpush2.bf16.msra.mxu0 %v3903_v5  ;;  %2174 = vmatpush2.bf16.msra.mxu1 %v3906_v7  ;;  %v3972_v5 = vld [vmem:[#allocation8 + $0x268] ss:$16 sps:$4 sm:$0xff]   ;;  %v3977_v7 = vld [vmem:[#allocation8 + $0xc] ss:$16 sps:$4 sm:$0xff]  }
 0x16a   :  { %2138 = vmatprep.subr.bf16.mxu0 %v3911_v8  ;;  %2175 = vmatprep.subr.bf16.mxu1 %v3914_v9  ;;  %v3980_v8 = vld [vmem:[#allocation8 + $0x24c] ss:$16 sps:$4 sm:$0xff]   ;;  %v3975_v9 = vld [vmem:[#allocation8 + $0x8] ss:$16 sps:$4 sm:$0xff]  }
 0x16d   :  { %2139 = vmatpush2.bf16.msra.mxu0 %v3909_v11  ;;  %2176 = vmatpush2.bf16.msra.mxu1 %v3912_v12  ;;  %v3978_v11 = vld [vmem:[#allocation8 + $0x248] ss:$16 sps:$4 sm:$0xff]   ;;  %v3983_v12 = vld [vmem:[#allocation8 + $0x1ec] ss:$16 sps:$4 sm:$0xff]  }
 0x16e   :  { %2140 = vmatprep.subr.bf16.mxu0 %v3917_v15  ;;  %2177 = vmatprep.subr.bf16.mxu1 %v3920_v16  ;;  %v3981_v15 = vld [vmem:[#allocation8 + $0x1e8] ss:$16 sps:$4 sm:$0xff]  }
 0x16f   :  { %v3984_v16 = vld [vmem:[#allocation8 + $0x228] ss:$16 sps:$4 sm:$0xff]  }
 0x171   :  { %2141 = vmatpush2.bf16.msra.mxu0 %v3915_v17  ;;  %2178 = vmatpush2.bf16.msra.mxu1 %v3918_v18  ;;  %v3989_v17 = vld [vmem:[#allocation8 + $0x1cc] ss:$16 sps:$4 sm:$0xff]  }
 0x172   :  { %2142 = vmatprep.subr.bf16.mxu0 %v3923_v20  ;;  %2179 = vmatprep.subr.bf16.mxu1 %v3926_v21  ;;  %v3992_v18 = vld [vmem:[#allocation8 + $0x20c] ss:$16 sps:$4 sm:$0xff]   ;;  %v3990_v20 = vld [vmem:[#allocation8 + $0x208] ss:$16 sps:$4 sm:$0xff]  }
 0x173   :  { %v3995_v21 = vld [vmem:[#allocation8 + $0x1ac] ss:$16 sps:$4 sm:$0xff]  }
 0x175   :  { %2143 = vmatpush2.bf16.msra.mxu0 %v3921_v22  ;;  %2180 = vmatpush2.bf16.msra.mxu1 %v3924_v23  ;;  %v3998_v22 = vld [vmem:[#allocation8 + $0x3ec] ss:$16 sps:$4 sm:$0xff]   ;;  %v3993_v23 = vld [vmem:[#allocation8 + $0x1a8] ss:$16 sps:$4 sm:$0xff]  }
 0x176   :  { %2144 = vmatprep.subr.bf16.mxu0 %v3929_v27  ;;  %2181 = vmatprep.subr.bf16.mxu1 %v3932_v28  ;;  %v4004_v27 = vld [vmem:[#allocation8 + $0x3cc] ss:$16 sps:$4 sm:$0xff]   ;;  %v3999_v28 = vld [vmem:[#allocation8 + $0x188] ss:$16 sps:$4 sm:$0xff]  }
 0x179   :  { %2145 = vmatpush2.bf16.msra.mxu0 %v3927_v29  ;;  %2182 = vmatpush2.bf16.msra.mxu1 %v3930_v31  ;;  %v4002_v29 = vld [vmem:[#allocation8 + $0x3c8] ss:$16 sps:$4 sm:$0xff]   ;;  %v4007_v31 = vld [vmem:[#allocation8 + $0x16c] ss:$16 sps:$4 sm:$0xff]  }
 0x17a   :  { %2183 = vmatprep.subr.bf16.mxu1 %v3935_v34  ;;  %2196 = vmatprep.subr.bf16.mxu0 %v3938_v35  ;;  %v4008_v34 = vld [vmem:[#allocation8 + $0x3a8] ss:$16 sps:$4 sm:$0xff]   ;;  %v4013_v35 = vld [vmem:[#allocation8 + $0x14c] ss:$16 sps:$4 sm:$0xff]  }
 0x17c   :  { %2147 = vmatmul.mubr.bf16.vlgmr.msra.gmra.mxu0 %v4641_v41 }
 0x17d   :  { %2184 = vmatpush2.bf16.msra.mxu1 %v3933_v13  ;;  %2197 = vmatpush1.bf16.msra.mxu0 %v3936_v36  ;;  %v4016_v13 = vld [vmem:[#allocation8 + $0x38c] ss:$16 sps:$4 sm:$0xff]   ;;  %v4011_v36 = vld [vmem:[#allocation8 + $0x148] ss:$16 sps:$4 sm:$0xff]  }
 0x17e   :  { %2228 = vmatprep.mubr.bf16.mxu0 %v4607_v54  ;;  %2185 = vmatprep.subr.bf16.mxu1 %v3941_v43  ;;  %v3954_v54 = vld [vmem:[#allocation8 + $0x2c8] ss:$16 sps:$4 sm:$0xff]   ;;  %v4019_v43 = vld [vmem:[#allocation8 + $0x12c] ss:$16 sps:$4 sm:$0xff]  }
 0x17f   :  { %2198 = vmatprep.subr.bf16.mxu0 %v3944_v44  ;;  %v4022_v44 = vld [vmem:[#allocation8 + $0x36c] ss:$16 sps:$4 sm:$0xff]  }
 0x181   :  { %2186 = vmatpush2.bf16.msra.mxu1 %v3939_v39  ;;  %2199 = vmatpush1.bf16.msra.mxu0 %v3942_v46  ;;  %v4017_v39 = vld [vmem:[#allocation8 + $0x128] ss:$16 sps:$4 sm:$0xff]  }
 0x182   :  { %2200 = vmatprep.subr.bf16.mxu0 %v3947_v50  ;;  %2237 = vmatprep.subr.bf16.mxu1 %v3950_v51  ;;  %v4020_v46 = vld [vmem:[#allocation8 + $0x368] ss:$16 sps:$4 sm:$0xff]   ;;  %v4028_v50 = vld [vmem:[#allocation8 + $0x34c] ss:$16 sps:$4 sm:$0xff]  }
 0x183   :  { %v4023_v51 = vld [vmem:[#allocation8 + $0x108] ss:$16 sps:$4 sm:$0xff]  }
 0x184   :  { %2188 = vmatmul.mubr.bf16.vlgmr.msra.gmra.mxu1 %v4646_v53 }
 0x185   :  { %2201 = vmatpush1.bf16.msra.mxu0 %v3945_v30  ;;  %2238 = vmatpush1.bf16.msra.mxu1 %v3948_v52  ;;  %v4026_v30 = vld [vmem:[#allocation8 + $0x348] ss:$16 sps:$4 sm:$0xff]   ;;  %v4031_v52 = vld [vmem:[#allocation8 + $0x32c] ss:$16 sps:$4 sm:$0xff]  }
 0x186   :  { %2269 = vmatprep.mubr.bf16.mxu1 %v4617_v6  ;;  %2202 = vmatprep.subr.bf16.mxu0 %v3953_v55  ;;  %v3974_v6 = vld [vmem:[#allocation8 + $0x26c] ss:$16 sps:$4 sm:$0xff]  }
 0x187   :  { %2239 = vmatprep.subr.bf16.mxu1 %v3956_v56  ;;  %v4034_v55 = vld [vmem:[#allocation8 + $0x4ec] ss:$16 sps:$4 sm:$0xff]   ;;  %v4029_v56 = vld [vmem:[#allocation8 + $0x328] ss:$16 sps:$4 sm:$0xff]  }
 0x189   :  { %2203 = vmatpush1.bf16.msra.mxu0 %v3951_v58  ;;  %2240 = vmatpush1.bf16.msra.mxu1 %v3954_v54  ;;  %v4032_v58 = vld [vmem:[#allocation8 + $0x4e8] ss:$16 sps:$4 sm:$0xff]   ;;  %v4037_v54 = vld [vmem:[#allocation8 + $0x30c] ss:$16 sps:$4 sm:$0xff]  }
 0x18a   :  { %2204 = vmatprep.subr.bf16.mxu0 %v3959_v59  ;;  %2241 = vmatprep.subr.bf16.mxu1 %v3962_v60  ;;  %v4040_v59 = vld [vmem:[#allocation8 + $0x4cc] ss:$16 sps:$4 sm:$0xff]   ;;  %v4035_v60 = vld [vmem:[#allocation8 + $0x308] ss:$16 sps:$4 sm:$0xff]  }
 0x18d   :  { %2205 = vmatpush1.bf16.msra.mxu0 %v3957_v61  ;;  %2242 = vmatpush1.bf16.msra.mxu1 %v3960_v62  ;;  %v4038_v61 = vld [vmem:[#allocation8 + $0x4c8] ss:$16 sps:$4 sm:$0xff]   ;;  %v4043_v62 = vld [vmem:[#allocation8 + $0x4ac] ss:$16 sps:$4 sm:$0xff]  }
 0x18e   :  { %2206 = vmatprep.subr.bf16.mxu0 %v3965_v63  ;;  %2243 = vmatprep.subr.bf16.mxu1 %v3968_v0  ;;  %v4046_v63 = vld [vmem:[#allocation8 + $0x6ec] ss:$16 sps:$4 sm:$0xff]   ;;  %v4041_v0 = vld [vmem:[#allocation8 + $0x4a8] ss:$16 sps:$4 sm:$0xff]  }
 0x191   :  { %2207 = vmatpush1.bf16.msra.mxu0 %v3963_v1  ;;  %2244 = vmatpush1.bf16.msra.mxu1 %v3966_v2  ;;  %v4044_v1 = vld [vmem:[#allocation8 + $0x6e8] ss:$16 sps:$4 sm:$0xff]   ;;  %v4049_v2 = vld [vmem:[#allocation8 + $0x48c] ss:$16 sps:$4 sm:$0xff]  }
 0x192   :  { %2208 = vmatprep.subr.bf16.mxu0 %v3971_v3  ;;  %2245 = vmatprep.subr.bf16.mxu1 %v3974_v6  ;;  %v4052_v3 = vld [vmem:[#allocation8 + $0x6cc] ss:$16 sps:$4 sm:$0xff]   ;;  %v4050_v6 = vld [vmem:[#allocation8 + $0x6c8] ss:$16 sps:$4 sm:$0xff]  }
 0x195   :  { %2209 = vmatpush1.bf16.msra.mxu0 %v3969_v4  ;;  %2246 = vmatpush1.bf16.msra.mxu1 %v3972_v5  ;;  %v4058_v4 = vld [vmem:[#allocation8 + $0x6ac] ss:$16 sps:$4 sm:$0xff]   ;;  %v4053_v5 = vld [vmem:[#allocation8 + $0x468] ss:$16 sps:$4 sm:$0xff]  }
 0x196   :  { %2210 = vmatprep.subr.bf16.mxu0 %v3977_v7  ;;  %2247 = vmatprep.subr.bf16.mxu1 %v3980_v8  ;;  %v4056_v7 = vld [vmem:[#allocation8 + $0x6a8] ss:$16 sps:$4 sm:$0xff]   ;;  %v4061_v8 = vld [vmem:[#allocation8 + $0x44c] ss:$16 sps:$4 sm:$0xff]  }
 0x199   :  { %2211 = vmatpush1.bf16.msra.mxu0 %v3975_v9  ;;  %2248 = vmatpush1.bf16.msra.mxu1 %v3978_v11  ;;  %v4064_v9 = vld [vmem:[#allocation8 + $0x68c] ss:$16 sps:$4 sm:$0xff]   ;;  %v4062_v11 = vld [vmem:[#allocation8 + $0x688] ss:$16 sps:$4 sm:$0xff]  }
 0x19a   :  { %2212 = vmatprep.subr.bf16.mxu0 %v3983_v12  ;;  %2249 = vmatprep.subr.bf16.mxu1 %v3986_v14  ;;  %v4067_v12 = vld [vmem:[#allocation8 + $0x42c] ss:$16 sps:$4 sm:$0xff]   ;;  %v4065_v14 = vld [vmem:[#allocation8 + $0x428] ss:$16 sps:$4 sm:$0xff]  }
 0x19d   :  { %2213 = vmatpush2.bf16.msra.mxu0 %v3981_v15  ;;  %2250 = vmatpush1.bf16.msra.mxu1 %v3984_v16  ;;  %v4068_v15 = vld [vmem:[#allocation8 + $0x668] ss:$16 sps:$4 sm:$0xff]   ;;  %v4073_v16 = vld [vmem:[#allocation8 + $0x40c] ss:$16 sps:$4 sm:$0xff]  }
 0x19e   :  { %2214 = vmatprep.subr.bf16.mxu0 %v3989_v17  ;;  %2251 = vmatprep.subr.bf16.mxu1 %v3992_v18  ;;  %v4076_v17 = vld [vmem:[#allocation8 + $0x64c] ss:$16 sps:$4 sm:$0xff]   ;;  %v4071_v18 = vld [vmem:[#allocation8 + $0x408] ss:$16 sps:$4 sm:$0xff]  }
 0x1a1   :  { %2215 = vmatpush2.bf16.msra.mxu0 %v3987_v19  ;;  %2252 = vmatpush1.bf16.msra.mxu1 %v3990_v20  ;;  %v4074_v19 = vld [vmem:[#allocation8 + $0x648] ss:$16 sps:$4 sm:$0xff]   ;;  %v4079_v20 = vld [vmem:[#allocation8 + $0x5ec] ss:$16 sps:$4 sm:$0xff]  }
 0x1a2   :  { %2216 = vmatprep.subr.bf16.mxu0 %v3995_v21  ;;  %2253 = vmatprep.subr.bf16.mxu1 %v3998_v22  ;;  %v4082_v21 = vld [vmem:[#allocation8 + $0x62c] ss:$16 sps:$4 sm:$0xff]   ;;  %v4077_v22 = vld [vmem:[#allocation8 + $0x5e8] ss:$16 sps:$4 sm:$0xff]  }
 0x1a5   :  { %2217 = vmatpush2.bf16.msra.mxu0 %v3993_v23  ;;  %2254 = vmatpush2.bf16.msra.mxu1 %v3996_v24  ;;  %v4080_v23 = vld [vmem:[#allocation8 + $0x628] ss:$16 sps:$4 sm:$0xff]   ;;  %v4085_v24 = vld [vmem:[#allocation8 + $0x5cc] ss:$16 sps:$4 sm:$0xff]  }
 0x1a6   :  { %2218 = vmatprep.subr.bf16.mxu0 %v4001_v25  ;;  %2255 = vmatprep.subr.bf16.mxu1 %v4004_v27  ;;  %v4088_v25 = vld [vmem:[#allocation8 + $0x60c] ss:$16 sps:$4 sm:$0xff]   ;;  %v4083_v27 = vld [vmem:[#allocation8 + $0x5c8] ss:$16 sps:$4 sm:$0xff]  }
 0x1a9   :  { %2219 = vmatpush2.bf16.msra.mxu0 %v3999_v28  ;;  %2256 = vmatpush2.bf16.msra.mxu1 %v4002_v29  ;;  %v4086_v28 = vld [vmem:[#allocation8 + $0x608] ss:$16 sps:$4 sm:$0xff]   ;;  %v4091_v29 = vld [vmem:[#allocation8 + $0x5ac] ss:$16 sps:$4 sm:$0xff]  }
 0x1aa   :  { %2220 = vmatprep.subr.bf16.mxu0 %v4007_v31  ;;  %2257 = vmatprep.subr.bf16.mxu1 %v4010_v32  ;;  %v4094_v31 = vld [vmem:[#allocation8 + $0x7ec] ss:$16 sps:$4 sm:$0xff]   ;;  %v4089_v32 = vld [vmem:[#allocation8 + $0x5a8] ss:$16 sps:$4 sm:$0xff]  }
 0x1ad   :  { %2221 = vmatpush2.bf16.msra.mxu0 %v4005_v33  ;;  %2258 = vmatpush2.bf16.msra.mxu1 %v4008_v34  ;;  %v4092_v33 = vld [vmem:[#allocation8 + $0x7e8] ss:$16 sps:$4 sm:$0xff]   ;;  %v4097_v34 = vld [vmem:[#allocation8 + $0x58c] ss:$16 sps:$4 sm:$0xff]  }
 0x1ae   :  { %2222 = vmatprep.subr.bf16.mxu0 %v4013_v35  ;;  %2259 = vmatprep.subr.bf16.mxu1 %v4016_v13  ;;  %v4100_v35 = vld [vmem:[#allocation8 + $0x7cc] ss:$16 sps:$4 sm:$0xff]   ;;  %v4095_v13 = vld [vmem:[#allocation8 + $0x588] ss:$16 sps:$4 sm:$0xff]  }
 0x1b1   :  { %2223 = vmatpush2.bf16.msra.mxu0 %v4011_v36  ;;  %2260 = vmatpush2.bf16.msra.mxu1 %v4014_v42  ;;  %v4098_v36 = vld [vmem:[#allocation8 + $0x7c8] ss:$16 sps:$4 sm:$0xff]   ;;  %v4103_v42 = vld [vmem:[#allocation8 + $0x56c] ss:$16 sps:$4 sm:$0xff]  }
 0x1b2   :  { %2224 = vmatprep.subr.bf16.mxu0 %v4019_v43  ;;  %2261 = vmatprep.subr.bf16.mxu1 %v4022_v44  ;;  %v4106_v43 = vld [vmem:[#allocation8 + $0x7ac] ss:$16 sps:$4 sm:$0xff]   ;;  %v4101_v44 = vld [vmem:[#allocation8 + $0x568] ss:$16 sps:$4 sm:$0xff]  }
 0x1b5   :  { %2225 = vmatpush2.bf16.msra.mxu0 %v4017_v39  ;;  %2262 = vmatpush2.bf16.msra.mxu1 %v4020_v46  ;;  %v4104_v39 = vld [vmem:[#allocation8 + $0x7a8] ss:$16 sps:$4 sm:$0xff]   ;;  %v4109_v46 = vld [vmem:[#allocation8 + $0x54c] ss:$16 sps:$4 sm:$0xff]  }
 0x1b6   :  { %2226 = vmatprep.subr.bf16.mxu0 %v4025_v49  ;;  %2263 = vmatprep.subr.bf16.mxu1 %v4028_v50  ;;  %v4112_v49 = vld [vmem:[#allocation8 + $0x78c] ss:$16 sps:$4 sm:$0xff]   ;;  %v4107_v50 = vld [vmem:[#allocation8 + $0x548] ss:$16 sps:$4 sm:$0xff]  }
 0x1b9   :  { %2227 = vmatpush2.bf16.msra.mxu0 %v4023_v51  ;;  %2264 = vmatpush2.bf16.msra.mxu1 %v4026_v30  ;;  %v4110_v51 = vld [vmem:[#allocation8 + $0x788] ss:$16 sps:$4 sm:$0xff]   ;;  %v4115_v30 = vld [vmem:[#allocation8 + $0x52c] ss:$16 sps:$4 sm:$0xff]  }
 0x1ba   :  { %2265 = vmatprep.subr.bf16.mxu1 %v4031_v52  ;;  %2278 = vmatprep.subr.bf16.mxu0 %v4034_v55  ;;  %v4118_v52 = vld [vmem:[#allocation8 + $0x76c] ss:$16 sps:$4 sm:$0xff]   ;;  %v4113_v55 = vld [vmem:[#allocation8 + $0x528] ss:$16 sps:$4 sm:$0xff]  }
 0x1bc   :  { %2229 = vmatmul.mubr.bf16.vlgmr.msra.gmra.mxu0 %v4612_v57  ;;  %v4047_v57 = vld [vmem:[#allocation8 + $0x488] ss:$16 sps:$4 sm:$0xff]  }
 0x1bd   :  { %2266 = vmatpush2.bf16.msra.mxu1 %v4029_v56  ;;  %2279 = vmatpush1.bf16.msra.mxu0 %v4032_v58  ;;  %v4116_v56 = vld [vmem:[#allocation8 + $0x768] ss:$16 sps:$4 sm:$0xff]   ;;  %v4121_v58 = vld [vmem:[#allocation8 + $0x50c] ss:$16 sps:$4 sm:$0xff]  }
 0x1be   :  { %2310 = vmatprep.mubr.bf16.mxu0 %v4627_v26  ;;  %2267 = vmatprep.subr.bf16.mxu1 %v4037_v54  ;;  %v4055_v26 = vld [vmem:[#allocation8 + $0x46c] ss:$16 sps:$4 sm:$0xff]  }
 0x1bf   :  { %2280 = vmatprep.subr.bf16.mxu0 %v4040_v59  ;;  %v4124_v54 = vld [vmem:[#allocation8 + $0x74c] ss:$16 sps:$4 sm:$0xff]   ;;  %v4119_v59 = vld [vmem:[#allocation8 + $0x508] ss:$16 sps:$4 sm:$0xff]  }
 0x1c1   :  { %2268 = vmatpush2.bf16.msra.mxu1 %v4035_v60  ;;  %2281 = vmatpush1.bf16.msra.mxu0 %v4038_v61  ;;  %v4122_v60 = vld [vmem:[#allocation8 + $0x748] ss:$16 sps:$4 sm:$0xff]   ;;  %v4127_v61 = vld [vmem:[#allocation8 + $0x72c] ss:$16 sps:$4 sm:$0xff]  }
 0x1c2   :  { %2282 = vmatprep.subr.bf16.mxu0 %v4043_v62  ;;  %2319 = vmatprep.subr.bf16.mxu1 %v4046_v63  ;;  %v4133_v62 = vld [vmem:[#allocation10 + $0x74] ss:$8 sps:$4 sm:$0xff]   ;;  %v4125_v63 = vld [vmem:[#allocation8 + $0x728] ss:$16 sps:$4 sm:$0xff]  }
 0x1c4   :  { %2270 = vmatmul.mubr.bf16.vlgmr.msra.gmra.mxu1 %v4620_v10  ;;  %v4059_v10 = vld [vmem:[#allocation8 + $0x448] ss:$16 sps:$4 sm:$0xff]  }
 0x1c5   :  { %2283 = vmatpush1.bf16.msra.mxu0 %v4041_v0  ;;  %2320 = vmatpush1.bf16.msra.mxu1 %v4044_v1  ;;  %v4131_v0 = vld [vmem:[#allocation10 + $0x70] ss:$8 sps:$4 sm:$0xff]   ;;  %v4130_v1 = vld [vmem:[#allocation8 + $0x70c] ss:$16 sps:$4 sm:$0xff]  }
 0x1c6   :  { %2351 = vmatprep.mubr.bf16.mxu1 %v4633_v47  ;;  %2284 = vmatprep.subr.bf16.mxu0 %v4049_v2  ;;  %v4070_v47 = vld [vmem:[#allocation8 + $0x66c] ss:$16 sps:$4 sm:$0xff]  }
 0x1c7   :  { %2321 = vmatprep.subr.bf16.mxu1 %v4052_v3  ;;  %v4136_v2 = vld [vmem:[#allocation10 + $0x64] ss:$8 sps:$4 sm:$0xff]  }
 0x1c9   :  { %2285 = vmatpush1.bf16.msra.mxu0 %v4047_v57  ;;  %2322 = vmatpush1.bf16.msra.mxu1 %v4050_v6  ;;  %v4128_v57 = vld [vmem:[#allocation8 + $0x708] ss:$16 sps:$4 sm:$0xff]  }
 0x1ca   :  { %2286 = vmatprep.subr.bf16.mxu0 %v4055_v26  ;;  %2323 = vmatprep.subr.bf16.mxu1 %v4058_v4  ;;  %v4134_v6 = vld [vmem:[#allocation10 + $0x60] ss:$8 sps:$4 sm:$0xff]   ;;  %v4139_v4 = vld [vmem:[#allocation10 + $0x54] ss:$8 sps:$4 sm:$0xff]  }
 0x1cd   :  { %2287 = vmatpush1.bf16.msra.mxu0 %v4053_v5  ;;  %2324 = vmatpush1.bf16.msra.mxu1 %v4056_v7  ;;  %v4137_v7 = vld [vmem:[#allocation10 + $0x50] ss:$8 sps:$4 sm:$0xff]  }
 0x1ce   :  { %2288 = vmatprep.subr.bf16.mxu0 %v4061_v8  ;;  %2325 = vmatprep.subr.bf16.mxu1 %v4064_v9  ;;  %v4142_v9 = vld [vmem:[#allocation10 + $0x44] ss:$8 sps:$4 sm:$0xff]  }
 0x1d1   :  { %2289 = vmatpush1.bf16.msra.mxu0 %v4059_v10  ;;  %2326 = vmatpush1.bf16.msra.mxu1 %v4062_v11  ;;  %v4140_v10 = vld [vmem:[#allocation10 + $0x40] ss:$8 sps:$4 sm:$0xff]  }
 0x1d2   :  { %2290 = vmatprep.subr.bf16.mxu0 %v4067_v12  ;;  %2327 = vmatprep.subr.bf16.mxu1 %v4070_v47  ;;  %v4145_v12 = vld [vmem:[#allocation10 + $0x34] ss:$8 sps:$4 sm:$0xff]  }
 0x1d5   :  { %2291 = vmatpush1.bf16.msra.mxu0 %v4065_v14  ;;  %2328 = vmatpush1.bf16.msra.mxu1 %v4068_v15  ;;  %v4143_v14 = vld [vmem:[#allocation10 + $0x30] ss:$8 sps:$4 sm:$0xff]  }
 0x1d6   :  { %2292 = vmatprep.subr.bf16.mxu0 %v4073_v16  ;;  %2329 = vmatprep.subr.bf16.mxu1 %v4076_v17  ;;  %v4148_v16 = vld [vmem:[#allocation10 + $0x24] ss:$8 sps:$4 sm:$0xff]   ;;  %v4179_v17 = vld [vmem:[#allocation10 + $0x170] ss:$8 sps:$4 sm:$0xff]  }
 0x1d9   :  { %2293 = vmatpush1.bf16.msra.mxu0 %v4071_v18  ;;  %2330 = vmatpush1.bf16.msra.mxu1 %v4074_v19  ;;  %v4181_v18 = vld [vmem:[#allocation10 + $0x174] ss:$8 sps:$4 sm:$0xff]   ;;  %v4184_v19 = vld [vmem:[#allocation10 + $0x164] ss:$8 sps:$4 sm:$0xff]  }
 0x1da   :  { %2294 = vmatprep.subr.bf16.mxu0 %v4079_v20  ;;  %2331 = vmatprep.subr.bf16.mxu1 %v4082_v21  ;;  %v4182_v20 = vld [vmem:[#allocation10 + $0x160] ss:$8 sps:$4 sm:$0xff]   ;;  %v4151_v21 = vld [vmem:[#allocation10 + $0x14] ss:$8 sps:$4 sm:$0xff]  }
 0x1dd   :  { %2295 = vmatpush2.bf16.msra.mxu0 %v4077_v22  ;;  %2332 = vmatpush1.bf16.msra.mxu1 %v4080_v23  ;;  %v4187_v22 = vld [vmem:[#allocation10 + $0x154] ss:$8 sps:$4 sm:$0xff]   ;;  %v4149_v23 = vld [vmem:[#allocation10 + $0x10] ss:$8 sps:$4 sm:$0xff]  }
 0x1de   :  { %2296 = vmatprep.subr.bf16.mxu0 %v4085_v24  ;;  %2333 = vmatprep.subr.bf16.mxu1 %v4088_v25  ;;  %v4185_v24 = vld [vmem:[#allocation10 + $0x150] ss:$8 sps:$4 sm:$0xff]   ;;  %v4154_v25 = vld [vmem:[#allocation10 + $0x4] ss:$8 sps:$4 sm:$0xff]  }
 0x1e1   :  { %2297 = vmatpush2.bf16.msra.mxu0 %v4083_v27  ;;  %2334 = vmatpush1.bf16.msra.mxu1 %v4086_v28  ;;  %v4190_v27 = vld [vmem:[#allocation10 + $0x144] ss:$8 sps:$4 sm:$0xff]   ;;  %v4152_v28 = vld [vmem:[#allocation10] ss:$8 sps:$4 sm:$0xff]  }
 0x1e2   :  { %2298 = vmatprep.subr.bf16.mxu0 %v4091_v29  ;;  %2335 = vmatprep.subr.bf16.mxu1 %v4094_v31  ;;  %v4188_v29 = vld [vmem:[#allocation10 + $0x140] ss:$8 sps:$4 sm:$0xff]   ;;  %v4157_v31 = vld [vmem:[#allocation10 + $0xf4] ss:$8 sps:$4 sm:$0xff]  }
 0x1e5   :  { %2299 = vmatpush2.bf16.msra.mxu0 %v4089_v32  ;;  %2336 = vmatpush2.bf16.msra.mxu1 %v4092_v33  ;;  %v4193_v32 = vld [vmem:[#allocation10 + $0x134] ss:$8 sps:$4 sm:$0xff]   ;;  %v4155_v33 = vld [vmem:[#allocation10 + $0xf0] ss:$8 sps:$4 sm:$0xff]  }
 0x1e6   :  { %2300 = vmatprep.subr.bf16.mxu0 %v4097_v34  ;;  %2337 = vmatprep.subr.bf16.mxu1 %v4100_v35  ;;  %v4191_v34 = vld [vmem:[#allocation10 + $0x130] ss:$8 sps:$4 sm:$0xff]   ;;  %v4160_v35 = vld [vmem:[#allocation10 + $0xe4] ss:$8 sps:$4 sm:$0xff]  }
 0x1e9   :  { %2301 = vmatpush2.bf16.msra.mxu0 %v4095_v13  ;;  %2338 = vmatpush2.bf16.msra.mxu1 %v4098_v36  ;;  %v4196_v13 = vld [vmem:[#allocation10 + $0x124] ss:$8 sps:$4 sm:$0xff]   ;;  %v4158_v36 = vld [vmem:[#allocation10 + $0xe0] ss:$8 sps:$4 sm:$0xff]  }
 0x1ea   :  { %2302 = vmatprep.subr.bf16.mxu0 %v4103_v42  ;;  %2339 = vmatprep.subr.bf16.mxu1 %v4106_v43  ;;  %v4194_v42 = vld [vmem:[#allocation10 + $0x120] ss:$8 sps:$4 sm:$0xff]   ;;  %v4163_v43 = vld [vmem:[#allocation10 + $0xd4] ss:$8 sps:$4 sm:$0xff]  }
 0x1ed   :  { %2303 = vmatpush2.bf16.msra.mxu0 %v4101_v44  ;;  %2340 = vmatpush2.bf16.msra.mxu1 %v4104_v39  ;;  %v4199_v44 = vld [vmem:[#allocation10 + $0x114] ss:$8 sps:$4 sm:$0xff]   ;;  %v4161_v39 = vld [vmem:[#allocation10 + $0xd0] ss:$8 sps:$4 sm:$0xff]  }
 0x1ee   :  { %2304 = vmatprep.subr.bf16.mxu0 %v4109_v46  ;;  %2341 = vmatprep.subr.bf16.mxu1 %v4112_v49  ;;  %v4197_v46 = vld [vmem:[#allocation10 + $0x110] ss:$8 sps:$4 sm:$0xff]   ;;  %v4166_v49 = vld [vmem:[#allocation10 + $0xc4] ss:$8 sps:$4 sm:$0xff]  }
 0x1f1   :  { %2305 = vmatpush2.bf16.msra.mxu0 %v4107_v50  ;;  %2342 = vmatpush2.bf16.msra.mxu1 %v4110_v51  ;;  %v4202_v50 = vld [vmem:[#allocation10 + $0x104] ss:$8 sps:$4 sm:$0xff]   ;;  %v4164_v51 = vld [vmem:[#allocation10 + $0xc0] ss:$8 sps:$4 sm:$0xff]  }
 0x1f2   :  { %2306 = vmatprep.subr.bf16.mxu0 %v4115_v30  ;;  %2343 = vmatprep.subr.bf16.mxu1 %v4118_v52  ;;  %v4200_v30 = vld [vmem:[#allocation10 + $0x100] ss:$8 sps:$4 sm:$0xff]   ;;  %v4169_v52 = vld [vmem:[#allocation10 + $0xb4] ss:$8 sps:$4 sm:$0xff]  }
 0x1f5   :  { %2307 = vmatpush2.bf16.msra.mxu0 %v4113_v55  ;;  %2344 = vmatpush2.bf16.msra.mxu1 %v4116_v56  ;;  %v4205_v55 = vld [vmem:[#allocation10 + $0x1f4] ss:$8 sps:$4 sm:$0xff]   ;;  %v4167_v56 = vld [vmem:[#allocation10 + $0xb0] ss:$8 sps:$4 sm:$0xff]  }
 0x1f6   :  { %2308 = vmatprep.subr.bf16.mxu0 %v4121_v58  ;;  %2345 = vmatprep.subr.bf16.mxu1 %v4124_v54  ;;  %v4203_v58 = vld [vmem:[#allocation10 + $0x1f0] ss:$8 sps:$4 sm:$0xff]   ;;  %v4172_v54 = vld [vmem:[#allocation10 + $0xa4] ss:$8 sps:$4 sm:$0xff]  }
 0x1f9   :  { %2309 = vmatpush2.bf16.msra.mxu0 %v4119_v59  ;;  %2346 = vmatpush2.bf16.msra.mxu1 %v4122_v60  ;;  %v4208_v59 = vld [vmem:[#allocation10 + $0x1e4] ss:$8 sps:$4 sm:$0xff]   ;;  %v4170_v60 = vld [vmem:[#allocation10 + $0xa0] ss:$8 sps:$4 sm:$0xff]  }
 0x1fa   :  { %2347 = vmatprep.subr.bf16.mxu1 %v4127_v61  ;;  %2764 = vmatprep.subr.bf16.mxu0 %v4133_v62  ;;  %v4206_v61 = vld [vmem:[#allocation10 + $0x1e0] ss:$8 sps:$4 sm:$0xff]   ;;  %v4175_v62 = vld [vmem:[#allocation10 + $0x94] ss:$8 sps:$4 sm:$0xff]  }
 0x1fc   :  { %2311 = vmatmul.mubr.bf16.vlgmr.msra.gmra.mxu0 %v4641_v41  ;;  %v4655_v3 = vpop.f32.mrf.mxu0 }
 0x1fd   :  { %2348 = vmatpush2.bf16.msra.mxu1 %v4125_v63  ;;  %2765 = vmatpush1.bf16.msra.mxu0 %v4131_v0  ;;  %v4211_v63 = vld [vmem:[#allocation10 + $0x1d4] ss:$8 sps:$4 sm:$0xff]   ;;  %v4173_v0 = vld [vmem:[#allocation10 + $0x90] ss:$8 sps:$4 sm:$0xff]  }
 0x1fe   :  { %v4657_v26 = vpop.f32.mrf.mxu0  ;;  %2349 = vmatprep.subr.bf16.mxu1 %v4130_v1  ;;  %2766 = vmatprep.subr.bf16.mxu0 %v4136_v2  ;;  %v4209_v1 = vld [vmem:[#allocation10 + $0x1d0] ss:$8 sps:$4 sm:$0xff]   ;;  %v4178_v2 = vld [vmem:[#allocation10 + $0x84] ss:$8 sps:$4 sm:$0xff]  }
 0x200   :  { %v2070_v5 = vpop.f32.mrf.mxu0 }
 0x201   :  { %2350 = vmatpush2.bf16.msra.mxu1 %v4128_v57  ;;  %2767 = vmatpush1.bf16.msra.mxu0 %v4134_v6  ;;  %v4214_v57 = vld [vmem:[#allocation10 + $0x1c4] ss:$8 sps:$4 sm:$0xff]   ;;  %v4176_v6 = vld [vmem:[#allocation10 + $0x80] ss:$8 sps:$4 sm:$0xff]   ;;  %v4667_v5 = vld [vmem:[%s4722_s4] sm:$0xf] }
 0x202   :  { %v2071_v8 = vpop.f32.mrf.mxu0  ;;  %2768 = vmatprep.subr.bf16.mxu0 %v4139_v4  ;;  %2805 = vmatprep.subr.bf16.mxu1 %v4181_v18  ;;  %v4212_v4 = vld [vmem:[#allocation10 + $0x1c0] ss:$8 sps:$4 sm:$0xff]   ;;  %v4220_v18 = vld [vmem:[#allocation10 + $0x1a4] ss:$8 sps:$4 sm:$0xff]  }
 0x204   :  { %2352 = vmatmul.mubr.bf16.vlgmr.msra.gmra.mxu1 %v4646_v53  ;;  %v4660_v41 = vpop.f32.mrf.mxu1  ;;  %v4146_v53 = vld [vmem:[#allocation10 + $0x20] ss:$8 sps:$4 sm:$0xff]  }
 0x205   :  { %2769 = vmatpush1.bf16.msra.mxu0 %v4137_v7  ;;  %2806 = vmatpush1.bf16.msra.mxu1 %v4179_v17  ;;  %v735_v7 = vrot.slane %v4667_v5, %v4591_v38 }
 0x206   :  { %v4662_v11 = vpop.f32.mrf.mxu1  ;;  %2770 = vmatprep.subr.bf16.mxu0 %v4142_v9  ;;  %2807 = vmatprep.subr.bf16.mxu1 %v4184_v19  ;;  %v739_v9 = vrot.slane %v4667_v5, %v4596_v40 }
 0x208   :  { %v2111_v47 = vpop.f32.mrf.mxu1 }
 0x209   :  { %2771 = vmatpush1.bf16.msra.mxu0 %v4140_v10  ;;  %2808 = vmatpush1.bf16.msra.mxu1 %v4182_v20  ;;  %v4217_v10 = vld [vmem:[#allocation10 + $0x1b4] ss:$8 sps:$4 sm:$0xff]   ;;  %v4215_v47 = vld [vmem:[#allocation10 + $0x1b0] ss:$8 sps:$4 sm:$0xff]  }
 0x20a   :  { %v2112_v15 = vpop.f32.mrf.mxu1  ;;  %2772 = vmatprep.subr.bf16.mxu0 %v4145_v12  ;;  %2809 = vmatprep.subr.bf16.mxu1 %v4187_v22 }
 0x20d   :  { %2773 = vmatpush1.bf16.msra.mxu0 %v4143_v14  ;;  %2810 = vmatpush1.bf16.msra.mxu1 %v4185_v24  ;;  %v2067_v14 = vadd.f32 %v4655_v3, %v735_v7 }
 0x20e   :  { %2774 = vmatprep.subr.bf16.mxu0 %v4148_v16  ;;  %2811 = vmatprep.subr.bf16.mxu1 %v4190_v27  ;;  %v2069_v16 = vadd.f32 %v4657_v26, %v739_v9  ;;  %v4221_v27 = vld [vmem:[#allocation10 + $0x190] ss:$8 sps:$4 sm:$0xff]  }
 0x20f   :  { %v2108_v17 = vadd.f32 %v4660_v41, %v2067_v14 }
 0x210   :  { %v2110_v20 = vadd.f32 %v4662_v11, %v2069_v16 }
 0x211   :  { %2775 = vmatpush1.bf16.msra.mxu0 %v4146_v53  ;;  %2812 = vmatpush1.bf16.msra.mxu1 %v4188_v29  ;;  %v4218_v53 = vld [vmem:[#allocation10 + $0x1a0] ss:$8 sps:$4 sm:$0xff]  }
 0x212   :  { %2776 = vmatprep.subr.bf16.mxu0 %v4151_v21  ;;  %2813 = vmatprep.subr.bf16.mxu1 %v4193_v32 }
 0x215   :  { %2777 = vmatpush1.bf16.msra.mxu0 %v4149_v23  ;;  %2814 = vmatpush1.bf16.msra.mxu1 %v4191_v34 }
 0x216   :  { %2778 = vmatprep.subr.bf16.mxu0 %v4154_v25  ;;  %2815 = vmatprep.subr.bf16.mxu1 %v4196_v13  ;;  %v4223_v25 = vld [vmem:[#allocation10 + $0x194] ss:$8 sps:$4 sm:$0xff]  }
 0x219   :  { %2779 = vmatpush1.bf16.msra.mxu0 %v4152_v28  ;;  %2816 = vmatpush1.bf16.msra.mxu1 %v4194_v42 }
 0x21a   :  { %2780 = vmatprep.subr.bf16.mxu0 %v4157_v31  ;;  %2817 = vmatprep.subr.bf16.mxu1 %v4199_v44  ;;  %v4226_v31 = vld [vmem:[#allocation10 + $0x184] ss:$8 sps:$4 sm:$0xff]  }
 0x21d   :  { %2781 = vmatpush2.bf16.msra.mxu0 %v4155_v33  ;;  %2818 = vmatpush1.bf16.msra.mxu1 %v4197_v46  ;;  %v4224_v33 = vld [vmem:[#allocation10 + $0x180] ss:$8 sps:$4 sm:$0xff]  }
 0x21e   :  { %2782 = vmatprep.subr.bf16.mxu0 %v4160_v35  ;;  %2819 = vmatprep.subr.bf16.mxu1 %v4202_v50  ;;  %v4228_v50 = vld [vmem:[#allocation11 + $0x38] sm:$0xff]  }
 0x221   :  { %2783 = vmatpush2.bf16.msra.mxu0 %v4158_v36  ;;  %2820 = vmatpush1.bf16.msra.mxu1 %v4200_v30  ;;  %v4230_v30 = vld [vmem:[#allocation11 + $0x30] sm:$0xff]  }
 0x222   :  { %2784 = vmatprep.subr.bf16.mxu0 %v4163_v43  ;;  %2821 = vmatprep.subr.bf16.mxu1 %v4205_v55  ;;  %v4232_v55 = vld [vmem:[#allocation11 + $0x28] sm:$0xff]  }
 0x225   :  { %2785 = vmatpush2.bf16.msra.mxu0 %v4161_v39  ;;  %2822 = vmatpush2.bf16.msra.mxu1 %v4203_v58  ;;  %v4234_v58 = vld [vmem:[#allocation11 + $0x20] sm:$0xff]  }
 0x226   :  { %2786 = vmatprep.subr.bf16.mxu0 %v4166_v49  ;;  %2823 = vmatprep.subr.bf16.mxu1 %v4208_v59  ;;  %v4227_v49 = vld [vmem:[#allocation11 + $0x78] sm:$0xff]  }
 0x227   :  { %v4236_v59 = vld [vmem:[#allocation11 + $0x18] sm:$0xff]  }
 0x229   :  { %2787 = vmatpush2.bf16.msra.mxu0 %v4164_v51  ;;  %2824 = vmatpush2.bf16.msra.mxu1 %v4206_v61  ;;  %v4229_v51 = vld [vmem:[#allocation11 + $0x70] sm:$0xff]  }
 0x22a   :  { %2788 = vmatprep.subr.bf16.mxu0 %v4169_v52  ;;  %2825 = vmatprep.subr.bf16.mxu1 %v4211_v63  ;;  %v4231_v52 = vld [vmem:[#allocation11 + $0x68] sm:$0xff]   ;;  %v4238_v61 = vld [vmem:[#allocation11 + $0x10] sm:$0xff]  }
 0x22d   :  { %2789 = vmatpush2.bf16.msra.mxu0 %v4167_v56  ;;  %2826 = vmatpush2.bf16.msra.mxu1 %v4209_v1  ;;  %v4233_v56 = vld [vmem:[#allocation11 + $0x60] sm:$0xff]  }
 0x22e   :  { %2790 = vmatprep.subr.bf16.mxu0 %v4172_v54  ;;  %2827 = vmatprep.subr.bf16.mxu1 %v4214_v57  ;;  %v4235_v54 = vld [vmem:[#allocation11 + $0x58] sm:$0xff]  }
 0x231   :  { %2791 = vmatpush2.bf16.msra.mxu0 %v4170_v60  ;;  %2828 = vmatpush2.bf16.msra.mxu1 %v4212_v4  ;;  %v4237_v60 = vld [vmem:[#allocation11 + $0x50] sm:$0xff]  }
 0x232   :  { %2792 = vmatprep.subr.bf16.mxu0 %v4175_v62  ;;  %2829 = vmatprep.subr.bf16.mxu1 %v4217_v10  ;;  %v743_v62 = vrot.slane %v4667_v5, %v180_v45 }
 0x235   :  { %2793 = vmatpush2.bf16.msra.mxu0 %v4173_v0  ;;  %2830 = vmatpush2.bf16.msra.mxu1 %v4215_v47  ;;  %v747_v0 = vrot.slane %v4667_v5, %v184_v48  ;;  %v4239_v5 = vld [vmem:[#allocation11 + $0x48] sm:$0xff]  }
 0x236   :  { %2794 = vmatprep.subr.bf16.mxu0 %v4178_v2  ;;  %2831 = vmatprep.subr.bf16.mxu1 %v4220_v18 }
 0x239   :  { %2795 = vmatpush2.bf16.msra.mxu0 %v4176_v6  ;;  %2832 = vmatpush2.bf16.msra.mxu1 %v4218_v53 }
 0x23a   :  { %2833 = vmatprep.subr.bf16.mxu1 %v4223_v25  ;;  %3647 = vmatprep.subr.bf16.mxu0 %v4227_v49  ;;  %v4243_v25 = vld [vmem:[#allocation13 + $0x38] sm:$0xff]  }
 0x23c   :  { %v2148_v8 = vpop.f32.mrf.mxu0 }
 0x23d   :  { %v2149_v21 = vadd.f32 %v2148_v8, %v2108_v17  ;;  %2834 = vmatpush2.bf16.msra.mxu1 %v4221_v27  ;;  %v4244_v27 = vld [vmem:[#allocation13 + $0x30] sm:$0xff]  }
 0x23e   :  { %v2150_v12 = vpop.f32.mrf.mxu0  ;;  %2835 = vmatprep.subr.bf16.mxu1 %v4226_v31 }
 0x23f   :  { %v2151_v23 = vadd.f32 %v2150_v12, %v2110_v20  ;;  %v4240_v20 = vld [vmem:[#allocation11 + $0x8] sm:$0xff]  }
 0x240   :  { %v2152_v15 = vpop.f32.mrf.mxu0 }
 0x241   :  { %2836 = vmatpush2.bf16.msra.mxu1 %v4224_v33 }
 0x242   :  { %v2153_v19 = vpop.f32.mrf.mxu0 }
 0x244   :  { %v2189_v22 = vpop.f32.mrf.mxu1 }
 0x245   :  { %v2190_v24 = vadd.f32 %v2189_v22, %v2149_v21  ;;  %v4241_v22 = vld [vmem:[#allocation11 + $0x40] sm:$0xff]  }
 0x246   :  { %v2191_v3 = vpop.f32.mrf.mxu1 }
 0x247   :  { %v2192_v28 = vadd.f32 %v2191_v3, %v2151_v23  ;;  %v2360_v29 = vmax.f32 %v2190_v24, 0.0  ;;  %v4242_v24 = vld [vmem:[#allocation11] sm:$0xff]   ;;  %v4468_v3 = vmov 0.0  }
 0x248   :  { %v2193_v26 = vpop.f32.mrf.mxu1  ;;  %3687 = vmatprep.subr.bf16.mxu1 %v4468_v3 }
 0x249   :  { %v2361_v41 = vmax.f32 %v2192_v28, 0.0  ;;  %v2364_v11 = vpack.c.bf16 %v2360_v29, %v2360_v29  ;;  %v4245_v28 = vld [vmem:[#allocation13 + $0x28] sm:$0xff]   ;;  %v4246_v29 = vld [vmem:[#allocation13 + $0x20] sm:$0xff]   ;;  %v4247_v26 = vld [vmem:[#allocation13 + $0x18] sm:$0xff]  }
 0x24a   :  { %v2194_v32 = vpop.f32.mrf.mxu1 }
 0x24b   :  { %v2365_v34 = vpack.c.bf16 %v2361_v41, %v2361_v41  ;;  %v2432_v41 = vld [vmem:[%s4724_s6] sm:$0x3] }
 0x24c   :  { %v2437_v31 = vrot.slane %v2432_v41, %v4591_v38  ;;  %v2441_v32 = vrot.slane %v2432_v41, %v4596_v40  ;;  %v4249_v38 = vld [vmem:[#allocation13 + $0x8] sm:$0xff]   ;;  %v4250_v40 = vld [vmem:[#allocation13] sm:$0xff]  }
 0x24d   :  { %2796 = vmatprep.mubr.bf16.mxu0 %v2365_v34 }
 0x24e   :  { %2797 = vmatmul.mubr.bf16.vlgmr.msra.gmra.mxu0 %v2364_v11 }
 0x24f   :  { %3648 = vmatpush3.bf16.msra.mxu0 %v4228_v50  ;;  %v4248_v50 = vld [vmem:[#allocation13 + $0x10] sm:$0xff]  }
 0x250   :  { %3649 = vmatprep.subr.bf16.mxu0 %v4229_v51  ;;  %v4251_v51 = vld [vmem:[#allocation14 + $0x38] sm:$0xff]  }
 0x253   :  { %3650 = vmatpush3.bf16.msra.mxu0 %v4230_v30  ;;  %v4252_v30 = vld [vmem:[#allocation14 + $0x30] sm:$0xff]  }
 0x254   :  { %3651 = vmatprep.subr.bf16.mxu0 %v4231_v52  ;;  %v4253_v52 = vld [vmem:[#allocation14 + $0x28] sm:$0xff]  }
 0x257   :  { %3652 = vmatpush3.bf16.msra.mxu0 %v4232_v55  ;;  %v4254_v55 = vld [vmem:[#allocation14 + $0x20] sm:$0xff]  }
 0x258   :  { %3653 = vmatprep.subr.bf16.mxu0 %v4233_v56  ;;  %v4255_v56 = vld [vmem:[#allocation14 + $0x18] sm:$0xff]  }
 0x25b   :  { %3654 = vmatpush3.bf16.msra.mxu0 %v4234_v58  ;;  %v4256_v58 = vld [vmem:[#allocation14 + $0x10] sm:$0xff]  }
 0x25c   :  { %3655 = vmatprep.subr.bf16.mxu0 %v4235_v54 }
 0x25f   :  { %3656 = vmatpush3.bf16.msra.mxu0 %v4236_v59  ;;  %v3612_v59 = vld [vmem:[%s4726_s8] ss:$0 sm:$0xff] }
 0x260   :  { %3657 = vmatprep.subr.bf16.mxu0 %v4237_v60 }
 0x263   :  { %3658 = vmatpush3.bf16.msra.mxu0 %v4238_v61 }
 0x264   :  { %3659 = vmatprep.subr.bf16.mxu0 %v4239_v5 }
 0x267   :  { %3660 = vmatpush3.bf16.msra.mxu0 %v4240_v20 }
 0x268   :  { %3661 = vmatprep.subr.bf16.mxu0 %v4241_v22 }
 0x26b   :  { %3662 = vmatpush3.bf16.msra.mxu0 %v4242_v24 }
 0x26c   :  { %3707 = vmatprep.subr.bf16.mxu0 %v4468_v3 }
 0x27c   :  { %v2230_v35 = vpop.f32.mrf.mxu0 }
 0x27d   :  { %v2231_v2 = vadd.f32 %v2230_v35, %v743_v62 }
 0x27e   :  { %v2232_v13 = vpop.f32.mrf.mxu0 }
 0x27f   :  { %v2233_v6 = vadd.f32 %v2232_v13, %v747_v0 }
 0x280   :  { %v2234_v36 = vpop.f32.mrf.mxu0 }
 0x282   :  { %v2235_v42 = vpop.f32.mrf.mxu0 }
 0x284   :  { %v2271_v43 = vpop.f32.mrf.mxu1 }
 0x285   :  { %v2272_v4 = vadd.f32 %v2271_v43, %v2231_v2 }
 0x286   :  { %v2273_v44 = vpop.f32.mrf.mxu1 }
 0x287   :  { %v2274_v8 = vadd.f32 %v2273_v44, %v2233_v6  ;;  %v4258_v6 = vld [vmem:[#allocation14] sm:$0xff]  }
 0x288   :  { %v2275_v39 = vpop.f32.mrf.mxu1 }
 0x28a   :  { %v2276_v46 = vpop.f32.mrf.mxu1 }
 0x2bc   :  { %v2312_v63 = vpop.f32.mrf.mxu0 }
 0x2bd   :  { %v2313_v9 = vadd.f32 %v2312_v63, %v2272_v4  ;;  %v3629_v4 = vld [vmem:[%s4728_s10] ss:$0 sm:$0xff]  ;;  %s4419_s10 = scalar_lea.vmem %s3260_s19, 64 }
 0x2be   :  { %v2314_v1 = vpop.f32.mrf.mxu0  ;;  %p4420_p12 = scmp.ne.s32.totalorder %s3260_s19, %s4419_s10  ;;  %p4425_p0 = scmp.lt.s32.totalorder %s4419_s10, %s4419_s10 }
 0x2bf   :  { %v2315_v12 = vadd.f32 %v2314_v1, %v2274_v8 }
 0x2c0   :  { %v2316_v57 = vpop.f32.mrf.mxu0  ;;  %p4426_p1 = por %p4425_p0, %p4424_p13 }
 0x2c1   :  { %v4257_v57 = vld [vmem:[#allocation14 + $0x8] sm:$0xff]  }
 0x2c2   :  { %v2317_v7 = vpop.f32.mrf.mxu0  ;;  %p4427_p2 = pnand %p4426_p1, %p4420_p12 }
 0x2c4   :  { %v2353_v10 = vpop.f32.mrf.mxu1 }
 0x2c5   :  { %v2354_v47 = vadd.f32 %v2353_v10, %v2313_v9 }
 0x2c6   :  { %v2355_v14 = vpop.f32.mrf.mxu1 }
 0x2c7   :  { %v2356_v15 = vadd.f32 %v2355_v14, %v2315_v12  ;;  %v2362_v16 = vmax.f32 %v2354_v47, 0.0 }
 0x2c8   :  { %v2357_v45 = vpop.f32.mrf.mxu1 }
 0x2c9   :  { %v2363_v17 = vmax.f32 %v2356_v15, 0.0  ;;  %v2366_v19 = vpack.c.bf16 %v2362_v16, %v2362_v16  ;;  %v3638_v15 = vld [vmem:[%s4730_s12] ss:$0 sm:$0xff] }
 0x2ca   :  { %v2358_v18 = vpop.f32.mrf.mxu1 }
 0x2cb   :  { %v2367_v37 = vpack.c.bf16 %v2363_v17, %v2363_v17 }
 0x2cd   :  { %2837 = vmatprep.mubr.bf16.mxu1 %v2367_v37 }
 0x2ce   :  { %2838 = vmatmul.mubr.bf16.vlgmr.msra.gmra.mxu1 %v2366_v19 }
 0x2cf   :  { %3688 = vmatpush3.bf16.msra.mxu1 %v4243_v25  ;;  %3703 = vmatprep.mubr.msk.bf16.mxu1 %vm4469_vm1, %v4468_v3 }
 0x2d0   :  { %3689 = vmatprep.subr.bf16.mxu1 %v4468_v3 }
 0x2d3   :  { %3690 = vmatpush3.bf16.msra.mxu1 %v4244_v27 }
 0x2d4   :  { %3691 = vmatprep.subr.bf16.mxu1 %v4468_v3 }
 0x2d7   :  { %3692 = vmatpush3.bf16.msra.mxu1 %v4245_v28 }
 0x2d8   :  { %3693 = vmatprep.subr.bf16.mxu1 %v4468_v3 }
 0x2db   :  { %3694 = vmatpush3.bf16.msra.mxu1 %v4246_v29 }
 0x2dc   :  { %3695 = vmatprep.subr.bf16.mxu1 %v4468_v3 }
 0x2df   :  { %3696 = vmatpush3.bf16.msra.mxu1 %v4247_v26 }
 0x2e0   :  { %3697 = vmatprep.subr.bf16.mxu1 %v4468_v3 }
 0x2e3   :  { %3698 = vmatpush3.bf16.msra.mxu1 %v4248_v50 }
 0x2e4   :  { %3699 = vmatprep.subr.bf16.mxu1 %v4468_v3 }
 0x2e7   :  { %3700 = vmatpush3.bf16.msra.mxu1 %v4249_v38 }
 0x2e8   :  { %3701 = vmatprep.subr.bf16.mxu1 %v4468_v3 }
 0x2eb   :  { %3702 = vmatpush3.bf16.msra.mxu1 %v4250_v40 }
 0x30e   :  { %v2798_v48 = vpop.f32.mrf.mxu0 }
 0x30f   :  { %v2799_v33 = vadd.f32 %v2798_v48, %v2437_v31 }
 0x310   :  { %v2800_v53 = vpop.f32.mrf.mxu0 }
 0x311   :  { %v2801_v11 = vadd.f32 %v2800_v53, %v2441_v32 }
 0x312   :  { %v2802_v21 = vpop.f32.mrf.mxu0 }
 0x314   :  { %v2803_v23 = vpop.f32.mrf.mxu0 }
 0x38e   :  { %v2839_v34 = vpop.f32.mrf.mxu1 }
 0x38f   :  { %v2840_v35 = vadd.f32 %v2839_v34, %v2799_v33 }
 0x390   :  { %v2841_v13 = vpop.f32.mrf.mxu1 }
 0x391   :  { %v2842_v36 = vadd.f32 %v2841_v13, %v2801_v11  ;;  %v2846_v42 = vmax.f32 %v2840_v35, 0.0 }
 0x392   :  { %v2843_v43 = vpop.f32.mrf.mxu1 }
 0x393   :  { %v2847_v44 = vmax.f32 %v2842_v36, 0.0  ;;  %v2848_v49 = vpack.c.bf16 %v2846_v42, %v2846_v42 }
 0x394   :  { %v2844_v39 = vpop.f32.mrf.mxu1 }
 0x395   :  { %v2849_v46 = vpack.c.bf16 %v2847_v44, %v2847_v44 }
 0x397   :  { %3017 = vmatprep.mubr.bf16.mxu0 %v2849_v46 }
 0x398   :  { %3018 = vmatmul.mubr.bf16.vlgmr.msra.gmra.mxu0 %v2848_v49 }
 0x399   :  { %3723 = vmatprep.mubr.msk.bf16.mxu0 %vm4469_vm1, %v4468_v3  ;;  %3708 = vmatpush3.bf16.msra.mxu0 %v4251_v51 }
 0x39a   :  { %3709 = vmatprep.subr.bf16.mxu0 %v4468_v3 }
 0x39d   :  { %3710 = vmatpush3.bf16.msra.mxu0 %v4252_v30 }
 0x39e   :  { %3711 = vmatprep.subr.bf16.mxu0 %v4468_v3 }
 0x3a1   :  { %3712 = vmatpush3.bf16.msra.mxu0 %v4253_v52 }
 0x3a2   :  { %3713 = vmatprep.subr.bf16.mxu0 %v4468_v3 }
 0x3a5   :  { %3714 = vmatpush3.bf16.msra.mxu0 %v4254_v55 }
 0x3a6   :  { %3715 = vmatprep.subr.bf16.mxu0 %v4468_v3 }
 0x3a9   :  { %3716 = vmatpush3.bf16.msra.mxu0 %v4255_v56 }
 0x3aa   :  { %3717 = vmatprep.subr.bf16.mxu0 %v4468_v3 }
 0x3ad   :  { %3718 = vmatpush3.bf16.msra.mxu0 %v4256_v58 }
 0x3ae   :  { %3719 = vmatprep.subr.bf16.mxu0 %v4468_v3 }
 0x3b1   :  { %3720 = vmatpush3.bf16.msra.mxu0 %v4257_v57 }
 0x3b2   :  { %3721 = vmatprep.subr.bf16.mxu0 %v4468_v3 }
 0x3b5   :  { %3722 = vmatpush3.bf16.msra.mxu0 %v4258_v6 }
 0x458   :  { %v3663_v54 = vpop.f32.mrf.mxu0 }
 0x45a   :  { %v3664_v60 = vpop.f32.mrf.mxu0 }
 0x45b   :  { %v3665_v61 = vadd.f32 %v3664_v60, %v3663_v54 }
 0x45c   :  { %v3666_v62 = vpop.f32.mrf.mxu0 }
 0x45d   :  { %v3020_v63 = vadd.f32 %v3665_v61, %v3612_v59 }
 0x45e   :  { %v3667_v0 = vpop.f32.mrf.mxu0 }
 0x45f   :  { %v3025_v1 = vmax.f32 %v3020_v63, 0.0 }
 0x461   :  { %v3026_v2 = vpack.c.bf16 %v3025_v1, %v3025_v1 }
 0x463   :  { %3704 = vmatmul.mubr.bf16.vlgmr.msra.gmra.mxu1 %v3026_v2 }
 0x523   :  { %v3132_v7 = vpop.f32.mrf.mxu1 }
 0x524   :  { %v3133_v8 = vadd.f32 %v3629_v4, %v3132_v7 }
 0x525   :  { %v3705_v9 = vpop.f32.mrf.mxu1 }
 0x526   :  { %v3138_v10 = vmax.f32 %v3133_v8, 0.0 }
 0x527   :  { %v3135_v12 = vpop.f32.mrf.mxu1 }
 0x528   :  { %v3139_v47 = vpack.c.bf16 %v3138_v10, %v3138_v10 }
 0x529   :  { %v3706_v14 = vpop.f32.mrf.mxu1 }
 0x52a   :  { %3724 = vmatmul.mubr.bf16.vlgmr.msra.gmra.mxu0 %v3139_v47 }
 0x5ea   :  { %v3245_v16 = vpop.f32.mrf.mxu0 }
 0x5eb   :  { %v3246_v45 = vadd.f32 %v3638_v15, %v3245_v16 }
 0x5ec   :  { %v3725_v17 = vpop.f32.mrf.mxu0 }
 0x5ed   :  { %v3251_v18 = vpack.c.bf16 %v3246_v45, %v3246_v45 }
 0x5ee   :  { %v3248_v37 = vpop.f32.mrf.mxu0 }
 0x5ef   :  { %3252 = vst [vmem:[#allocation16] sm:$0xf] %v3251_v18 }
 0x5f0   :  { %v3726_v19 = vpop.f32.mrf.mxu0 }
 0x5f1   :  { %4430 = shalt.err (!%p4427_p2)
}
 0x5f2   :  { %3262 = dma.vmem_to_hbm [thread:$0]  %s3260_s19, 64, %s4731_s13, [#allocation4]  }
 0x5f3   :  { %4449 = dma.done.wait [#allocation4], 64  }
 0x5f4   :  { %4450 = vsyncadd [#allocation4], 4294967232 }
 0x5f5   :  { %3266 = vsyncpa [#allocation3], 1 }
 0x5f6   :  { %3267 = vsyncpa [#allocation6], 1 }
 0x5f7   :  { %3268 = vsyncpa [#allocation9], 1 }
 0x5f8   :  { %3269 = vsyncpa [#allocation12], 1 }
 0x5f9   :  { %3270 = vsyncpa [#allocation15], 1 }
 0x5fa   :  { %3271 = vsyncpa [#allocation4], 1 }

</bundles_post_ra>
